<compile_context>
chip_gen: v5e
topology: v5e:2x2
jax: 0.10.0
libtpu: 0.0.40
codegen_flags: <defaults>
</compile_context>

<pallas_src>
import jax
import jax.numpy as jnp
from jax.experimental import pallas as pl
from jax.experimental.pallas import tpu as pltpu

_LANES = 128

_CPARAMS = pltpu.CompilerParams(
    dimension_semantics=("parallel",),
    vmem_limit_bytes=32 * 1024 * 1024,
)


def _choose_tiling(batch, pix, *, sub=16, tm_cap=512):
    """(padded_batch, row_tile): M = padded_batch*pix is a multiple of `sub`,
    row_tile is a multiple of `sub` (bf16 sublane packing -> free in-kernel
    quadrant collapse) that divides M exactly (so the im2col build emits the
    final geometry, no extra pad copy), and the grid gets >=2 steps when M
    allows it (pipelining + v7x dual-TC sharding)."""
    bp = batch
    while (bp * pix) % sub:
        bp += 1
    m = bp * pix
    tm = sub
    d = sub
    limit = min(tm_cap, m // 2)
    while d <= limit:
        if m % d == 0:
            tm = d
        d += sub
    return bp, tm


def _sigmoid(z):
    # exp -> EUP; approx reciprocal keeps the divide's Newton step off the
    # VALU (v5e has only 4 VALU slots and no bf16 VPU).  Stable: 1/(1+e^-z).
    return pl.reciprocal(1.0 + jnp.exp(-z), approx=True)


# ----------------------------------------------------------------------------
# Kernel 1: fused conv-as-matmul + bias + sigmoid + 2x2 average pool.
#   p_ref : (4, TM, K) bf16  four pool-quadrant patch planes for TM pooled px
#   w_ref : (K, 128)   bf16  conv weight (Cin*KH*KW -> Cout, lane-padded)
#   b_ref : (1, 128)   f32   lane-padded bias
#   o_ref : (TM, 128)  bf16  pooled, sigmoid-activated output (lane-dense)
# The four quadrant dots are merged into a single (4*TM,K)@(K,128) matmul.
# ----------------------------------------------------------------------------
def _conv_pool_kernel(p_ref, w_ref, b_ref, o_ref):
    tm = p_ref.shape[1]
    k = p_ref.shape[2]
    p = p_ref[...].reshape(4 * tm, k)                 # layout-free: tm % 16 == 0
    z = jnp.dot(p, w_ref[...], preferred_element_type=jnp.float32) + b_ref[...]
    s = _sigmoid(z)
    acc = s[0:tm] + s[tm:2 * tm] + s[2 * tm:3 * tm] + s[3 * tm:4 * tm]
    o_ref[...] = (acc * 0.25).astype(o_ref.dtype)


# ----------------------------------------------------------------------------
# Kernel 2: fused MLP head: sigmoid(x@W1+b1) @ W2 + b2, then @ W3 + b3.
# Weights bf16 (f32 accumulation); intermediates stay in VMEM.
# ----------------------------------------------------------------------------
def _mlp_kernel(x_ref, w1_ref, b1_ref, w2_ref, b2_ref, w3_ref, b3_ref, o_ref):
    h = jnp.dot(x_ref[...], w1_ref[...], preferred_element_type=jnp.float32)
    h = _sigmoid(h + b1_ref[...]).astype(jnp.bfloat16)
    h = jnp.dot(h, w2_ref[...], preferred_element_type=jnp.float32) + b2_ref[...]
    o_ref[...] = (
        jnp.dot(h.astype(jnp.bfloat16), w3_ref[...],
                preferred_element_type=jnp.float32) + b3_ref[...]
    ).astype(o_ref.dtype)


# ----------------------------------------------------------------------------
# Wrappers
# ----------------------------------------------------------------------------
def conv_sigmoid_pool(x, w, b, *, padding, n_out):
    """x: (B,H,W,Cin) NHWC.  w: (Cin*25, 128) bf16, b: (1,128) f32.
    Returns pooled, sigmoid-activated NHWC output (B, Ho/2, Wo/2, n_out) bf16."""
    x = x.astype(jnp.bfloat16)
    B, H, W, C = x.shape
    KH = KW = 5
    Ho = H + 2 * padding - KH + 1
    Wo = W + 2 * padding - KW + 1
    HoP, WoP = Ho // 2, Wo // 2
    P = HoP * WoP
    K = C * KH * KW

    Bp, TM = _choose_tiling(B, P)
    Mp = Bp * P
    if Bp != B:  # a few dummy images so M % TM == 0 without a patch-pad copy
        x = jnp.pad(x, ((0, Bp - B), (0, 0), (0, 0), (0, 0)))
    if padding:
        x = jnp.pad(x, ((0, 0), (padding, padding), (padding, padding), (0, 0)))

    # Pool-quadrant im2col, built directly at the final (4, Mp, K) geometry in
    # bf16.  Column order = ci*KH*KW + ki*KW + kj (= torch weight.reshape(Cout,-1)).
    quads = []
    for dy in range(2):
        for dx in range(2):
            taps = []
            for ki in range(KH):
                for kj in range(KW):
                    taps.append(
                        x[:, dy + ki: dy + ki + 2 * HoP: 2,
                             dx + kj: dx + kj + 2 * WoP: 2, :]
                    )                                       # (Bp, HoP, WoP, C)
            t = jnp.stack(taps, axis=4)                     # (Bp,HoP,WoP,C,25)
            quads.append(t.reshape(Mp, K))
    patches = jnp.stack(quads, axis=0)                      # (4, Mp, K) bf16

    cost = pl.CostEstimate(
        flops=2 * 4 * Mp * K * _LANES,
        transcendentals=4 * Mp * _LANES,
        bytes_accessed=4 * Mp * K * 2 + K * _LANES * 2 + _LANES * 4
        + Mp * _LANES * 2,
    )
    out = pl.pallas_call(
        _conv_pool_kernel,
        out_shape=jax.ShapeDtypeStruct((Mp, _LANES), jnp.bfloat16),
        grid=(Mp // TM,),
        in_specs=[
            pl.BlockSpec((4, TM, K), lambda m: (0, m, 0)),
            pl.BlockSpec((K, _LANES), lambda m: (0, 0)),
            pl.BlockSpec((1, _LANES), lambda m: (0, 0)),
        ],
        out_specs=pl.BlockSpec((TM, _LANES), lambda m: (m, 0)),
        compiler_params=_CPARAMS,
        cost_estimate=cost,
    )(patches, w, b)
    return out[:B * P, :n_out].reshape(B, HoP, WoP, n_out)


def mlp_head(x, p):
    """x: (B, 400) bf16 (NHWC-flattened) -> (B, 10) f32 via one fused call."""
    x = x.astype(jnp.bfloat16)
    B, K = x.shape
    TM = B                       # largest multiple-of-8 divisor of B <= 256
    d, limit = 8, min(256, B // 2)
    while d <= limit:
        if B % d == 0:
            TM = d
        d += 8

    cost = pl.CostEstimate(
        flops=2 * B * (K * _LANES + 2 * _LANES * _LANES),
        transcendentals=B * _LANES,
        bytes_accessed=B * K * 2 + (K * _LANES + 2 * _LANES * _LANES) * 2
        + 3 * _LANES * 4 + B * _LANES * 4,
    )
    out = pl.pallas_call(
        _mlp_kernel,
        out_shape=jax.ShapeDtypeStruct((B, _LANES), jnp.float32),
        grid=(B // TM,),
        in_specs=[
            pl.BlockSpec((TM, K), lambda m: (m, 0)),
            pl.BlockSpec((K, _LANES), lambda m: (0, 0)),
            pl.BlockSpec((1, _LANES), lambda m: (0, 0)),
            pl.BlockSpec((_LANES, _LANES), lambda m: (0, 0)),
            pl.BlockSpec((1, _LANES), lambda m: (0, 0)),
            pl.BlockSpec((_LANES, _LANES), lambda m: (0, 0)),
            pl.BlockSpec((1, _LANES), lambda m: (0, 0)),
        ],
        out_specs=pl.BlockSpec((TM, _LANES), lambda m: (m, 0)),
        compiler_params=_CPARAMS,
        cost_estimate=cost,
    )(x, p["wl1"], p["bl1"], p["wl2"], p["bl2"], p["wl3"], p["bl3"])
    return out[:, :10]


# ----------------------------------------------------------------------------
# Parameters: PyTorch-shaped synthetic init, then transposed / permuted /
# lane-padded ONCE (outside the jitted forward).
# ----------------------------------------------------------------------------
def init_params(key):
    ks = jax.random.split(key, 10)

    def w(k, shape, scale=0.1):
        return (scale * jax.random.normal(k, shape)).astype(jnp.float32)

    return {
        "w1": w(ks[0], (6, 1, 5, 5)),   "b1": w(ks[1], (6,)),
        "w2": w(ks[2], (16, 6, 5, 5)),  "b2": w(ks[3], (16,)),
        "wl1": w(ks[4], (120, 400)),    "bl1": w(ks[5], (120,)),
        "wl2": w(ks[6], (84, 120)),     "bl2": w(ks[7], (84,)),
        "wl3": w(ks[8], (10, 84)),      "bl3": w(ks[9], (10,)),
    }


def _pad_lanes(m):
    k, n = m.shape
    return jnp.pad(m, ((0, 0), (0, _LANES - n))).astype(jnp.bfloat16)


def _pad_bias(b):
    return jnp.pad(b, (0, _LANES - b.shape[0])).reshape(1, _LANES).astype(jnp.float32)


def prepare_params(p):
    """Transpose / permute / lane-pad all weights once.  Padding MUST be zeros:
    padded output lanes carry sigmoid(0)=0.5 downstream and are only harmless
    because the next layer's padded weight rows are zero."""
    w1 = p["w1"].reshape(6, -1).T          # (25, 6)
    w2 = p["w2"].reshape(16, -1).T         # (150, 16)
    # Bake the torch NCHW-flatten permutation into linear1: torch column order
    # is c*25 + h*5 + w; our conv2 output is flattened NHWC (h*80 + w*16 + c).
    hh, ww, cc = jnp.meshgrid(jnp.arange(5), jnp.arange(5), jnp.arange(16),
                              indexing="ij")
    perm = (cc * 25 + hh * 5 + ww).reshape(-1)          # (400,)
    wl1 = p["wl1"][:, perm].T                           # (400, 120) NHWC row order
    return {
        "w1": _pad_lanes(w1),   "b1": _pad_bias(p["b1"]),
        "w2": _pad_lanes(w2),   "b2": _pad_bias(p["b2"]),
        "wl1": _pad_lanes(wl1), "bl1": _pad_bias(p["bl1"]),
        "wl2": _pad_lanes(jnp.pad(p["wl2"].T, ((0, _LANES - 120), (0, 0)))),
        "bl2": _pad_bias(p["bl2"]),
        "wl3": _pad_lanes(jnp.pad(p["wl3"].T, ((0, _LANES - 84), (0, 0)))),
        "bl3": _pad_bias(p["bl3"]),
    }


# ----------------------------------------------------------------------------
# Forward pass (matches torch: conv1→σ→pool→conv2→σ→pool→flatten→fc1→σ→fc2→fc3)
# ----------------------------------------------------------------------------
def forward(x, p):
    B = x.shape[0]
    x = x.transpose(0, 2, 3, 1).astype(jnp.bfloat16)                 # NCHW->NHWC
    x = conv_sigmoid_pool(x, p["w1"], p["b1"], padding=2, n_out=6)   # (B,14,14,6)
    x = conv_sigmoid_pool(x, p["w2"], p["b2"], padding=0, n_out=16)  # (B,5,5,16)
    x = x.reshape(B, 5 * 5 * 16)   # NHWC flatten; permutation baked into wl1
    return mlp_head(x, p)          # (B, 10) f32


if __name__ == "__main__":
    key = jax.random.PRNGKey(0)
    k_x, k_p = jax.random.split(key)
    # LeNet geometry implies 28x28 single-channel input (-> 16*5*5 = 400 feats).
    x = jax.random.normal(k_x, (2, 1, 28, 28), dtype=jnp.float32)
    params = prepare_params(init_params(k_p))   # pad/permute once, outside jit
    out = jax.jit(forward)(x, params)
    out = jax.block_until_ready(out)
    assert out.shape == (2, 10), out.shape
    print("KERNEL_OK")
</pallas_src>

<mosaic_0001>
module attributes {stable_mosaic.version = 11 : i64} {
  func.func @_conv_pool_kernel(%arg0: i32, %arg1: memref<4x112x25xbf16, #tpu.memory_space<vmem>>, %arg2: memref<25x128xbf16, #tpu.memory_space<vmem>>, %arg3: memref<1x128xf32, #tpu.memory_space<vmem>>, %arg4: memref<112x128xbf16, #tpu.memory_space<vmem>>) attributes {dimension_semantics = [#tpu.dimension_semantics<parallel>], iteration_bounds = array<i64: 7>, scalar_prefetch = 0 : i64, scratch_operands = 0 : i64, tpu.core_type = #tpu.core_type<tc>, window_params = [{transform_indices = @transform_0, window_bounds = array<i64: 4, 112, 25>}, {pipeline_mode = #tpu.pipeline_mode<synchronous>, transform_indices = @transform_1, window_bounds = array<i64: 25, 128>}, {pipeline_mode = #tpu.pipeline_mode<synchronous>, transform_indices = @transform_2, window_bounds = array<i64: 1, 128>}, {transform_indices = @transform_3, window_bounds = array<i64: 112, 128>}]} {
    %c0 = arith.constant 0 : index
    %c0_0 = arith.constant 0 : index
    %c0_1 = arith.constant 0 : index
    %0 = vector.load %arg1[%c0, %c0_0, %c0_1] : memref<4x112x25xbf16, #tpu.memory_space<vmem>>, vector<4x112x25xbf16>
    %1 = vector.shape_cast %0 : vector<4x112x25xbf16> to vector<448x25xbf16>
    %c0_2 = arith.constant 0 : index
    %c0_3 = arith.constant 0 : index
    %2 = vector.load %arg2[%c0_2, %c0_3] : memref<25x128xbf16, #tpu.memory_space<vmem>>, vector<25x128xbf16>
    %cst = arith.constant dense<0.000000e+00> : vector<448x128xf32>
    %3 = tpu.matmul %1, %2, %cst {dimension_numbers = #tpu.dot_dimension_numbers<[1], [0], [0], [1], [0, 0, 1, 1], [], []>} : vector<448x25xbf16>, vector<25x128xbf16>, vector<448x128xf32> -> vector<448x128xf32>
    %c0_4 = arith.constant 0 : index
    %c0_5 = arith.constant 0 : index
    %4 = vector.load %arg3[%c0_4, %c0_5] : memref<1x128xf32, #tpu.memory_space<vmem>>, vector<1x128xf32>
    %5 = vector.broadcast %4 : vector<1x128xf32> to vector<448x128xf32>
    %6 = arith.addf %3, %5 : vector<448x128xf32>
    %cst_6 = arith.constant 0.000000e+00 : f32
    %7 = vector.broadcast %cst_6 : f32 to vector<448x128xf32>
    %8 = arith.subf %7, %6 : vector<448x128xf32>
    %9 = math.exp %8 : vector<448x128xf32>
    %cst_7 = arith.constant 1.000000e+00 : f32
    %10 = vector.broadcast %cst_7 : f32 to vector<448x128xf32>
    %11 = arith.addf %10, %9 : vector<448x128xf32>
    %12 = tpu.reciprocal %11 {approx = true} : vector<448x128xf32> -> vector<448x128xf32>
    %13 = vector.extract_strided_slice %12 {offsets = [0, 0], sizes = [112, 128], strides = [1, 1]} : vector<448x128xf32> to vector<112x128xf32>
    %14 = vector.extract_strided_slice %12 {offsets = [112, 0], sizes = [112, 128], strides = [1, 1]} : vector<448x128xf32> to vector<112x128xf32>
    %15 = arith.addf %13, %14 : vector<112x128xf32>
    %16 = vector.extract_strided_slice %12 {offsets = [224, 0], sizes = [112, 128], strides = [1, 1]} : vector<448x128xf32> to vector<112x128xf32>
    %17 = arith.addf %15, %16 : vector<112x128xf32>
    %18 = vector.extract_strided_slice %12 {offsets = [336, 0], sizes = [112, 128], strides = [1, 1]} : vector<448x128xf32> to vector<112x128xf32>
    %19 = arith.addf %17, %18 : vector<112x128xf32>
    %cst_8 = arith.constant 2.500000e-01 : f32
    %20 = vector.broadcast %cst_8 : f32 to vector<112x128xf32>
    %21 = arith.mulf %19, %20 : vector<112x128xf32>
    %22 = arith.truncf %21 : vector<112x128xf32> to vector<112x128xbf16>
    %c0_9 = arith.constant 0 : index
    %c0_10 = arith.constant 0 : index
    %23 = vector.load %arg4[%c0_9, %c0_10] : memref<112x128xbf16, #tpu.memory_space<vmem>>, vector<112x128xbf16>
    tpu.vector_store %arg4[%c0_9, %c0_10], %22 {strides = array<i32>} : memref<112x128xbf16, #tpu.memory_space<vmem>>, vector<112x128xbf16>,
    return
  }
  func.func @transform_0(%arg0: i32) -> (i32, i32, i32) {
    %c0_i32 = arith.constant 0 : i32
    %c0_i32_0 = arith.constant 0 : i32
    %c0_i32_1 = arith.constant 0 : i32
    return %c0_i32, %arg0, %c0_i32_0 : i32, i32, i32
  }
  func.func @transform_1(%arg0: i32) -> (i32, i32) {
    %c0_i32 = arith.constant 0 : i32
    %c0_i32_0 = arith.constant 0 : i32
    %c0_i32_1 = arith.constant 0 : i32
    return %c0_i32, %c0_i32_0 : i32, i32
  }
  func.func @transform_2(%arg0: i32) -> (i32, i32) {
    %c0_i32 = arith.constant 0 : i32
    %c0_i32_0 = arith.constant 0 : i32
    %c0_i32_1 = arith.constant 0 : i32
    return %c0_i32, %c0_i32_0 : i32, i32
  }
  func.func @transform_3(%arg0: i32) -> (i32, i32) {
    %c0_i32 = arith.constant 0 : i32
    %c0_i32_0 = arith.constant 0 : i32
    return %arg0, %c0_i32 : i32, i32
  }
}

module attributes {stable_mosaic.version = 11 : i64} {
  func.func @_conv_pool_kernel(%arg0: i32, %arg1: memref<4x80x150xbf16, #tpu.memory_space<vmem>>, %arg2: memref<150x128xbf16, #tpu.memory_space<vmem>>, %arg3: memref<1x128xf32, #tpu.memory_space<vmem>>, %arg4: memref<80x128xbf16, #tpu.memory_space<vmem>>) attributes {dimension_semantics = [#tpu.dimension_semantics<parallel>], iteration_bounds = array<i64: 5>, scalar_prefetch = 0 : i64, scratch_operands = 0 : i64, tpu.core_type = #tpu.core_type<tc>, window_params = [{transform_indices = @transform_0, window_bounds = array<i64: 4, 80, 150>}, {pipeline_mode = #tpu.pipeline_mode<synchronous>, transform_indices = @transform_1, window_bounds = array<i64: 150, 128>}, {pipeline_mode = #tpu.pipeline_mode<synchronous>, transform_indices = @transform_2, window_bounds = array<i64: 1, 128>}, {transform_indices = @transform_3, window_bounds = array<i64: 80, 128>}]} {
    %c0 = arith.constant 0 : index
    %c0_0 = arith.constant 0 : index
    %c0_1 = arith.constant 0 : index
    %0 = vector.load %arg1[%c0, %c0_0, %c0_1] : memref<4x80x150xbf16, #tpu.memory_space<vmem>>, vector<4x80x150xbf16>
    %1 = vector.shape_cast %0 : vector<4x80x150xbf16> to vector<320x150xbf16>
    %c0_2 = arith.constant 0 : index
    %c0_3 = arith.constant 0 : index
    %2 = vector.load %arg2[%c0_2, %c0_3] : memref<150x128xbf16, #tpu.memory_space<vmem>>, vector<150x128xbf16>
    %cst = arith.constant dense<0.000000e+00> : vector<320x128xf32>
    %3 = tpu.matmul %1, %2, %cst {dimension_numbers = #tpu.dot_dimension_numbers<[1], [0], [0], [1], [0, 0, 1, 1], [], []>} : vector<320x150xbf16>, vector<150x128xbf16>, vector<320x128xf32> -> vector<320x128xf32>
    %c0_4 = arith.constant 0 : index
    %c0_5 = arith.constant 0 : index
    %4 = vector.load %arg3[%c0_4, %c0_5] : memref<1x128xf32, #tpu.memory_space<vmem>>, vector<1x128xf32>
    %5 = vector.broadcast %4 : vector<1x128xf32> to vector<320x128xf32>
    %6 = arith.addf %3, %5 : vector<320x128xf32>
    %cst_6 = arith.constant 0.000000e+00 : f32
    %7 = vector.broadcast %cst_6 : f32 to vector<320x128xf32>
    %8 = arith.subf %7, %6 : vector<320x128xf32>
    %9 = math.exp %8 : vector<320x128xf32>
    %cst_7 = arith.constant 1.000000e+00 : f32
    %10 = vector.broadcast %cst_7 : f32 to vector<320x128xf32>
    %11 = arith.addf %10, %9 : vector<320x128xf32>
    %12 = tpu.reciprocal %11 {approx = true} : vector<320x128xf32> -> vector<320x128xf32>
    %13 = vector.extract_strided_slice %12 {offsets = [0, 0], sizes = [80, 128], strides = [1, 1]} : vector<320x128xf32> to vector<80x128xf32>
    %14 = vector.extract_strided_slice %12 {offsets = [80, 0], sizes = [80, 128], strides = [1, 1]} : vector<320x128xf32> to vector<80x128xf32>
    %15 = arith.addf %13, %14 : vector<80x128xf32>
    %16 = vector.extract_strided_slice %12 {offsets = [160, 0], sizes = [80, 128], strides = [1, 1]} : vector<320x128xf32> to vector<80x128xf32>
    %17 = arith.addf %15, %16 : vector<80x128xf32>
    %18 = vector.extract_strided_slice %12 {offsets = [240, 0], sizes = [80, 128], strides = [1, 1]} : vector<320x128xf32> to vector<80x128xf32>
    %19 = arith.addf %17, %18 : vector<80x128xf32>
    %cst_8 = arith.constant 2.500000e-01 : f32
    %20 = vector.broadcast %cst_8 : f32 to vector<80x128xf32>
    %21 = arith.mulf %19, %20 : vector<80x128xf32>
    %22 = arith.truncf %21 : vector<80x128xf32> to vector<80x128xbf16>
    %c0_9 = arith.constant 0 : index
    %c0_10 = arith.constant 0 : index
    %23 = vector.load %arg4[%c0_9, %c0_10] : memref<80x128xbf16, #tpu.memory_space<vmem>>, vector<80x128xbf16>
    tpu.vector_store %arg4[%c0_9, %c0_10], %22 {strides = array<i32>} : memref<80x128xbf16, #tpu.memory_space<vmem>>, vector<80x128xbf16>,
    return
  }
  func.func @transform_0(%arg0: i32) -> (i32, i32, i32) {
    %c0_i32 = arith.constant 0 : i32
    %c0_i32_0 = arith.constant 0 : i32
    %c0_i32_1 = arith.constant 0 : i32
    return %c0_i32, %arg0, %c0_i32_0 : i32, i32, i32
  }
  func.func @transform_1(%arg0: i32) -> (i32, i32) {
    %c0_i32 = arith.constant 0 : i32
    %c0_i32_0 = arith.constant 0 : i32
    %c0_i32_1 = arith.constant 0 : i32
    return %c0_i32, %c0_i32_0 : i32, i32
  }
  func.func @transform_2(%arg0: i32) -> (i32, i32) {
    %c0_i32 = arith.constant 0 : i32
    %c0_i32_0 = arith.constant 0 : i32
    %c0_i32_1 = arith.constant 0 : i32
    return %c0_i32, %c0_i32_0 : i32, i32
  }
  func.func @transform_3(%arg0: i32) -> (i32, i32) {
    %c0_i32 = arith.constant 0 : i32
    %c0_i32_0 = arith.constant 0 : i32
    return %arg0, %c0_i32 : i32, i32
  }
}

module attributes {stable_mosaic.version = 11 : i64} {
  func.func @_mlp_kernel(%arg0: i32, %arg1: memref<2x400xbf16, #tpu.memory_space<vmem>>, %arg2: memref<400x128xbf16, #tpu.memory_space<vmem>>, %arg3: memref<1x128xf32, #tpu.memory_space<vmem>>, %arg4: memref<128x128xbf16, #tpu.memory_space<vmem>>, %arg5: memref<1x128xf32, #tpu.memory_space<vmem>>, %arg6: memref<128x128xbf16, #tpu.memory_space<vmem>>, %arg7: memref<1x128xf32, #tpu.memory_space<vmem>>, %arg8: memref<2x128xf32, #tpu.memory_space<vmem>>) attributes {dimension_semantics = [#tpu.dimension_semantics<parallel>], iteration_bounds = array<i64: 1>, scalar_prefetch = 0 : i64, scratch_operands = 0 : i64, tpu.core_type = #tpu.core_type<tc>, window_params = [{transform_indices = @transform_0, window_bounds = array<i64: 2, 400>}, {pipeline_mode = #tpu.pipeline_mode<synchronous>, transform_indices = @transform_1, window_bounds = array<i64: 400, 128>}, {pipeline_mode = #tpu.pipeline_mode<synchronous>, transform_indices = @transform_2, window_bounds = array<i64: 1, 128>}, {pipeline_mode = #tpu.pipeline_mode<synchronous>, transform_indices = @transform_3, window_bounds = array<i64: 128, 128>}, {pipeline_mode = #tpu.pipeline_mode<synchronous>, transform_indices = @transform_4, window_bounds = array<i64: 1, 128>}, {pipeline_mode = #tpu.pipeline_mode<synchronous>, transform_indices = @transform_5, window_bounds = array<i64: 128, 128>}, {pipeline_mode = #tpu.pipeline_mode<synchronous>, transform_indices = @transform_6, window_bounds = array<i64: 1, 128>}, {transform_indices = @transform_7, window_bounds = array<i64: 2, 128>}]} {
    %c0 = arith.constant 0 : index
    %c0_0 = arith.constant 0 : index
    %0 = vector.load %arg1[%c0, %c0_0] : memref<2x400xbf16, #tpu.memory_space<vmem>>, vector<2x400xbf16>
    %c0_1 = arith.constant 0 : index
    %c0_2 = arith.constant 0 : index
    %1 = vector.load %arg2[%c0_1, %c0_2] : memref<400x128xbf16, #tpu.memory_space<vmem>>, vector<400x128xbf16>
    %cst = arith.constant dense<0.000000e+00> : vector<2x128xf32>
    %2 = tpu.matmul %0, %1, %cst {dimension_numbers = #tpu.dot_dimension_numbers<[1], [0], [0], [1], [0, 0, 1, 1], [], []>} : vector<2x400xbf16>, vector<400x128xbf16>, vector<2x128xf32> -> vector<2x128xf32>
    %c0_3 = arith.constant 0 : index
    %c0_4 = arith.constant 0 : index
    %3 = vector.load %arg3[%c0_3, %c0_4] : memref<1x128xf32, #tpu.memory_space<vmem>>, vector<1x128xf32>
    %4 = vector.broadcast %3 : vector<1x128xf32> to vector<2x128xf32>
    %5 = arith.addf %2, %4 : vector<2x128xf32>
    %cst_5 = arith.constant 0.000000e+00 : f32
    %6 = vector.broadcast %cst_5 : f32 to vector<2x128xf32>
    %7 = arith.subf %6, %5 : vector<2x128xf32>
    %8 = math.exp %7 : vector<2x128xf32>
    %cst_6 = arith.constant 1.000000e+00 : f32
    %9 = vector.broadcast %cst_6 : f32 to vector<2x128xf32>
    %10 = arith.addf %9, %8 : vector<2x128xf32>
    %11 = tpu.reciprocal %10 {approx = true} : vector<2x128xf32> -> vector<2x128xf32>
    %12 = arith.truncf %11 : vector<2x128xf32> to vector<2x128xbf16>
    %c0_7 = arith.constant 0 : index
    %c0_8 = arith.constant 0 : index
    %13 = vector.load %arg4[%c0_7, %c0_8] : memref<128x128xbf16, #tpu.memory_space<vmem>>, vector<128x128xbf16>
    %cst_9 = arith.constant dense<0.000000e+00> : vector<2x128xf32>
    %14 = tpu.matmul %12, %13, %cst_9 {dimension_numbers = #tpu.dot_dimension_numbers<[1], [0], [0], [1], [0, 0, 1, 1], [], []>} : vector<2x128xbf16>, vector<128x128xbf16>, vector<2x128xf32> -> vector<2x128xf32>
    %c0_10 = arith.constant 0 : index
    %c0_11 = arith.constant 0 : index
    %15 = vector.load %arg5[%c0_10, %c0_11] : memref<1x128xf32, #tpu.memory_space<vmem>>, vector<1x128xf32>
    %16 = vector.broadcast %15 : vector<1x128xf32> to vector<2x128xf32>
    %17 = arith.addf %14, %16 : vector<2x128xf32>
    %18 = arith.truncf %17 : vector<2x128xf32> to vector<2x128xbf16>
    %c0_12 = arith.constant 0 : index
    %c0_13 = arith.constant 0 : index
    %19 = vector.load %arg6[%c0_12, %c0_13] : memref<128x128xbf16, #tpu.memory_space<vmem>>, vector<128x128xbf16>
    %cst_14 = arith.constant dense<0.000000e+00> : vector<2x128xf32>
    %20 = tpu.matmul %18, %19, %cst_14 {dimension_numbers = #tpu.dot_dimension_numbers<[1], [0], [0], [1], [0, 0, 1, 1], [], []>} : vector<2x128xbf16>, vector<128x128xbf16>, vector<2x128xf32> -> vector<2x128xf32>
    %c0_15 = arith.constant 0 : index
    %c0_16 = arith.constant 0 : index
    %21 = vector.load %arg7[%c0_15, %c0_16] : memref<1x128xf32, #tpu.memory_space<vmem>>, vector<1x128xf32>
    %22 = vector.broadcast %21 : vector<1x128xf32> to vector<2x128xf32>
    %23 = arith.addf %20, %22 : vector<2x128xf32>
    %c0_17 = arith.constant 0 : index
    %c0_18 = arith.constant 0 : index
    %24 = vector.load %arg8[%c0_17, %c0_18] : memref<2x128xf32, #tpu.memory_space<vmem>>, vector<2x128xf32>
    tpu.vector_store %arg8[%c0_17, %c0_18], %23 {strides = array<i32>} : memref<2x128xf32, #tpu.memory_space<vmem>>, vector<2x128xf32>,
    return
  }
  func.func @transform_0(%arg0: i32) -> (i32, i32) {
    %c0_i32 = arith.constant 0 : i32
    %c0_i32_0 = arith.constant 0 : i32
    return %arg0, %c0_i32 : i32, i32
  }
  func.func @transform_1(%arg0: i32) -> (i32, i32) {
    %c0_i32 = arith.constant 0 : i32
    %c0_i32_0 = arith.constant 0 : i32
    %c0_i32_1 = arith.constant 0 : i32
    return %c0_i32, %c0_i32_0 : i32, i32
  }
  func.func @transform_2(%arg0: i32) -> (i32, i32) {
    %c0_i32 = arith.constant 0 : i32
    %c0_i32_0 = arith.constant 0 : i32
    %c0_i32_1 = arith.constant 0 : i32
    return %c0_i32, %c0_i32_0 : i32, i32
  }
  func.func @transform_3(%arg0: i32) -> (i32, i32) {
    %c0_i32 = arith.constant 0 : i32
    %c0_i32_0 = arith.constant 0 : i32
    %c0_i32_1 = arith.constant 0 : i32
    return %c0_i32, %c0_i32_0 : i32, i32
  }
  func.func @transform_4(%arg0: i32) -> (i32, i32) {
    %c0_i32 = arith.constant 0 : i32
    %c0_i32_0 = arith.constant 0 : i32
    %c0_i32_1 = arith.constant 0 : i32
    return %c0_i32, %c0_i32_0 : i32, i32
  }
  func.func @transform_5(%arg0: i32) -> (i32, i32) {
    %c0_i32 = arith.constant 0 : i32
    %c0_i32_0 = arith.constant 0 : i32
    %c0_i32_1 = arith.constant 0 : i32
    return %c0_i32, %c0_i32_0 : i32, i32
  }
  func.func @transform_6(%arg0: i32) -> (i32, i32) {
    %c0_i32 = arith.constant 0 : i32
    %c0_i32_0 = arith.constant 0 : i32
    %c0_i32_1 = arith.constant 0 : i32
    return %c0_i32, %c0_i32_0 : i32, i32
  }
  func.func @transform_7(%arg0: i32) -> (i32, i32) {
    %c0_i32 = arith.constant 0 : i32
    %c0_i32_0 = arith.constant 0 : i32
    return %arg0, %c0_i32 : i32, i32
  }
}

</mosaic_0001>

<bundles_post_ra>
// kernel: forward.3
= control target key start
LH: loop header
LB: loop body
LE: loop exit
PB: predicated region body
PF: predicated region fallthrough
CT: control target
= control target key end

     0   :  { %s1853_s12 = smov 0   ;;  %s1855_s13 = smov 0   ;;  %s2113_s0 = inlined_call_operand.vmem [shape: bf16[4,784,25], index: 0, kind: input, shape index: {}]   ;;  %s2114_s1 = inlined_call_operand.vmem [shape: bf16[25,128], index: 1, kind: input, shape index: {}]   ;;  %s2115_s2 = inlined_call_operand.vmem [shape: f32[1,128], index: 2, kind: input, shape index: {}]   ;;  %s2116_s3 = inlined_call_operand.vmem [shape: bf16[784,128], index: 3, kind: output, shape index: {}]  }
   0x1   :  { %s1857_s14 = smov 0  }
   0x2 LB: > { %s1320_s15 = sadd.s32 4294967295, %s1830_s14   ;;  %s1870_s16 = sadd.s32 1, %s1830_s14   ;;  %s1830_s14 = sphi %s1857_s14, %s2119_s14   ;;  %s1826_s13 = sphi %s1855_s13, %s2118_s13   ;;  %s1822_s12 = sphi %s1853_s12, %s2117_s12  }
   0x3   : > { %s17_s17 = ssub.s32 %s1830_s14, %s1870_s16  ;;  %s20_s18 = sadd.s32 1, %s1826_s13 }
   0x4   : > { %p18_p0 = scmp.eq.s32.totalorder %s17_s17, 0  ;;  %p27_p1 = scmp.ne.s32.totalorder %s1826_s13, %s1822_s12 }
   0x5   : > { %p28_p2 = scmp.eq.s32.totalorder %s1830_s14, 0  ;;  %p1323_p4 = scmp.ge.s32.totalorder %s1830_s14, 7 }
   0x6   : > { %s1879_s19 = scalar_select %p18_p0, %s1826_s13, %s20_s18  }
   0x7   : > { %p29_p3 = por %p28_p2, %p27_p1  ;;  %127 = sbr.rel (%p1323_p4) target bundleno = 45 (0x2d), region = 24 }
   0xc   : > { %130 = sbr.rel (!%p29_p3) target bundleno = 45 (0x2d), region = 28  ;;  %s132_s20 = sand.u32 (%p29_p3), 1, %s1826_s13  }
   0xd   : > { %s1477_s21 = smul.u32 (%p29_p3), 56, %s1830_s14 }
   0xe   : > { %s1555_s22 = smul.u32 (%p29_p3), 224, %s132_s20 }
   0xf   : > { %s1887_s25 = scalar_lea.vmem (%p29_p3), %s2113_s0, %s1477_s21 }
  0x10   : > { %v154_v0 = vld [vmem:[%s1887_s25] sm:$0xff] (%p29_p3)   ;;  %v158_v1 = vld [vmem:[%s1887_s25 + $0x8] sm:$0xff] (%p29_p3)   ;;  %v162_v2 = vld [vmem:[%s1887_s25 + $0x10] sm:$0xff] (%p29_p3)   ;;  %s1892_s26 = scalar_lea.vmem (%p29_p3), [#allocation2], %s1555_s22 }
  0x11   : > { %155 = vst [vmem:[%s1892_s26] sm:$0xff] %v154_v0   ;;  %v166_v3 = vld [vmem:[%s1887_s25 + $0x18] sm:$0xff]   ;;  %v170_v4 = vld [vmem:[%s1887_s25 + $0x20] sm:$0xff]   ;;  %v174_v5 = vld [vmem:[%s1887_s25 + $0x28] sm:$0xff]  }
  0x12   : > { %159 = vst [vmem:[%s1892_s26 + $0x8] sm:$0xff] %v158_v1   ;;  %v178_v6 = vld [vmem:[%s1887_s25 + $0x30] sm:$0xff]   ;;  %v182_v7 = vld [vmem:[%s1887_s25 + $0x188] sm:$0xff]   ;;  %v190_v9 = vld [vmem:[%s1887_s25 + $0x198] sm:$0xff]  }
  0x13   : > { %163 = vst [vmem:[%s1892_s26 + $0x10] sm:$0xff] %v162_v2   ;;  %v186_v8 = vld [vmem:[%s1887_s25 + $0x190] sm:$0xff]   ;;  %v194_v10 = vld [vmem:[%s1887_s25 + $0x1a0] sm:$0xff]   ;;  %v198_v11 = vld [vmem:[%s1887_s25 + $0x1a8] sm:$0xff]  }
  0x14   : > { %167 = vst [vmem:[%s1892_s26 + $0x18] sm:$0xff] %v166_v3   ;;  %v202_v12 = vld [vmem:[%s1887_s25 + $0x1b0] sm:$0xff]   ;;  %v206_v13 = vld [vmem:[%s1887_s25 + $0x1b8] sm:$0xff]   ;;  %v218_v16 = vld [vmem:[%s1887_s25 + $0x320] sm:$0xff]  }
  0x15   : > { %171 = vst [vmem:[%s1892_s26 + $0x20] sm:$0xff] %v170_v4   ;;  %v210_v14 = vld [vmem:[%s1887_s25 + $0x310] sm:$0xff]   ;;  %v214_v15 = vld [vmem:[%s1887_s25 + $0x318] sm:$0xff]   ;;  %v222_v17 = vld [vmem:[%s1887_s25 + $0x328] sm:$0xff]  }
  0x16   : > { %175 = vst [vmem:[%s1892_s26 + $0x28] sm:$0xff] %v174_v5   ;;  %v226_v18 = vld [vmem:[%s1887_s25 + $0x330] sm:$0xff]   ;;  %v230_v19 = vld [vmem:[%s1887_s25 + $0x338] sm:$0xff]   ;;  %v234_v20 = vld [vmem:[%s1887_s25 + $0x340] sm:$0xff]  }
  0x17   : > { %179 = vst [vmem:[%s1892_s26 + $0x30] sm:$0xff] %v178_v6   ;;  %v238_v21 = vld [vmem:[%s1887_s25 + $0x498] sm:$0xff]   ;;  %v242_v22 = vld [vmem:[%s1887_s25 + $0x4a0] sm:$0xff]   ;;  %v246_v23 = vld [vmem:[%s1887_s25 + $0x4a8] sm:$0xff]  }
  0x18   : > { %183 = vst [vmem:[%s1892_s26 + $0x38] sm:$0xff] %v182_v7   ;;  %v250_v24 = vld [vmem:[%s1887_s25 + $0x4b0] sm:$0xff]   ;;  %v254_v25 = vld [vmem:[%s1887_s25 + $0x4b8] sm:$0xff]   ;;  %v258_v26 = vld [vmem:[%s1887_s25 + $0x4c0] sm:$0xff]  }
  0x19   : > { %187 = vst [vmem:[%s1892_s26 + $0x40] sm:$0xff] %v186_v8   ;;  %v262_v27 = vld [vmem:[%s1887_s25 + $0x4c8] sm:$0xff]  }
  0x1a   : > { %191 = vst [vmem:[%s1892_s26 + $0x48] sm:$0xff] %v190_v9  }
  0x1b   : > { %195 = vst [vmem:[%s1892_s26 + $0x50] sm:$0xff] %v194_v10  }
  0x1c   : > { %199 = vst [vmem:[%s1892_s26 + $0x58] sm:$0xff] %v198_v11  }
  0x1d   : > { %203 = vst [vmem:[%s1892_s26 + $0x60] sm:$0xff] %v202_v12  }
  0x1e   : > { %207 = vst [vmem:[%s1892_s26 + $0x68] sm:$0xff] %v206_v13  }
  0x1f   : > { %211 = vst [vmem:[%s1892_s26 + $0x70] sm:$0xff] %v210_v14  }
  0x20   : > { %215 = vst [vmem:[%s1892_s26 + $0x78] sm:$0xff] %v214_v15  }
  0x21   : > { %219 = vst [vmem:[%s1892_s26 + $0x80] sm:$0xff] %v218_v16  }
  0x22   : > { %223 = vst [vmem:[%s1892_s26 + $0x88] sm:$0xff] %v222_v17  }
  0x23   : > { %227 = vst [vmem:[%s1892_s26 + $0x90] sm:$0xff] %v226_v18  }
  0x24   : > { %231 = vst [vmem:[%s1892_s26 + $0x98] sm:$0xff] %v230_v19  }
  0x25   : > { %235 = vst [vmem:[%s1892_s26 + $0xa0] sm:$0xff] %v234_v20  }
  0x26   : > { %239 = vst [vmem:[%s1892_s26 + $0xa8] sm:$0xff] %v238_v21  }
  0x27   : > { %243 = vst [vmem:[%s1892_s26 + $0xb0] sm:$0xff] %v242_v22  }
  0x28   : > { %247 = vst [vmem:[%s1892_s26 + $0xb8] sm:$0xff] %v246_v23  }
  0x29   : > { %251 = vst [vmem:[%s1892_s26 + $0xc0] sm:$0xff] %v250_v24  }
  0x2a   : > { %255 = vst [vmem:[%s1892_s26 + $0xc8] sm:$0xff] %v254_v25  }
  0x2b   : > { %259 = vst [vmem:[%s1892_s26 + $0xd0] sm:$0xff] %v258_v26  }
  0x2c   : > { %263 = vst [vmem:[%s1892_s26 + $0xd8] sm:$0xff] %v262_v27  }
  0x2d PF: > { %p1325_p5 = scmp.ge.s32.totalorder %s1830_s14, 1  ;;  %p400_p6 = scmp.lt.s32.totalorder %s1830_s14, 8 }
  0x2f   : > { %p401_p7 = pnand %p1325_p5, %p400_p6 }
  0x30   : > { %s407_s4 = sand.u32 (!%p401_p7), 1, %s1822_s12   ;;  %s2038_s11 = smul.u32 (!%p401_p7), 14, %s1320_s15 }
  0x31   : > { %404 = sbr.rel (%p401_p7) target bundleno = 338 (0x152), region = 69 }
  0x32   : > { %s1556_s5 = smul.u32 (!%p401_p7), 224, %s407_s4  ;;  %p432_p8 = scmp.lt.s32.totalorder (!%p401_p7), %s2038_s11, 97 }
  0x34   : > { %s1959_s8 = scalar_lea.vmem (!%p401_p7), [#allocation2], %s1556_s5 }
  0x36   : > { %v1445_v28 = vld [vmem:[%s2114_s1 + $0x8] sm:$0xf]  ;;  %v1507_v29 = vld [vmem:[%s2114_s1 + $0x8] sm:$0x10]  ;;  %vm738_vm0 = vcmask 1043456   ;;  %vm739_vm1 = vcmask 1044480  }
  0x37   : > { %v1446_v30 = vor.u32 %v1507_v29, %v1445_v28  ;;  %v1832_v31 = vmov 65535   ;;  %v1506_v35 = vld [vmem:[%s2114_s1] sm:$0xff]  ;;  %v1485_v37 = vld [vmem:[%s1959_s8 + $0x38] sm:$0xff]  ;;  %vm653_vm2 = vcmask 203776   ;;  %v1492_v38 = vld [vmem:[%s1959_s8 + $0x70] sm:$0xff]  ;;  %s2121_s11 = smov (!%p432_p8, %s2038_s11), 97 }
  0x38   : > { %v740_v32 = vsel %vm738_vm0, 4294967295, %v1832_v31  ;;  %v1478_v36 = vld [vmem:[%s1959_s8] sm:$0xff]  ;;  %v1499_v39 = vld [vmem:[%s1959_s8 + $0xa8] sm:$0xff]  ;;  %v1493_v42 = vld [vmem:[%s1959_s8 + $0x78] sm:$0xff]  ;;  %s1326_s12 = sshll.u32 %s2121_s11, 2 }
  0x39   : > { %v741_v33 = vsel %vm739_vm1, %v740_v32, 0  ;;  %v1479_v40 = vld [vmem:[%s1959_s8 + $0x8] sm:$0xff]  ;;  %v1486_v41 = vld [vmem:[%s1959_s8 + $0x40] sm:$0xff]  ;;  %v1500_v43 = vld [vmem:[%s1959_s8 + $0xb0] sm:$0xff]  ;;  %s2058_s17 = scalar_lea.vmem %s2116_s3, %s1326_s12 }
  0x3a   : > { %v743_v34 = vand.u32 %v1446_v30, %v741_v33  ;;  %v1480_v44 = vld [vmem:[%s1959_s8 + $0x10] sm:$0xff]  ;;  %v1487_v45 = vld [vmem:[%s1959_s8 + $0x48] sm:$0xff]  ;;  %v1494_v46 = vld [vmem:[%s1959_s8 + $0x80] sm:$0xff] }
  0x3b   : > { %v1501_v47 = vld [vmem:[%s1959_s8 + $0xb8] sm:$0xff]  ;;  %v1488_v49 = vld [vmem:[%s1959_s8 + $0x50] sm:$0xff]  ;;  %v1495_v50 = vld [vmem:[%s1959_s8 + $0x88] sm:$0xff] }
  0x3c   : > { %751 = vmatpush.bf16.msra.mxu0 %v743_v34  ;;  %1549 = vmatpush.bf16.msra.mxu1 %v743_v34  ;;  %v1481_v48 = vld [vmem:[%s1959_s8 + $0x18] sm:$0xff]  ;;  %v1502_v51 = vld [vmem:[%s1959_s8 + $0xc0] sm:$0xff]  ;;  %v1496_v54 = vld [vmem:[%s1959_s8 + $0x90] sm:$0xff] }
  0x3d   : > { %1550 = vmatpush.bf16.msra.mxu2 %v743_v34  ;;  %1551 = vmatpush.bf16.msra.mxu3 %v743_v34  ;;  %v1482_v52 = vld [vmem:[%s1959_s8 + $0x20] sm:$0xff]  ;;  %v1489_v53 = vld [vmem:[%s1959_s8 + $0x58] sm:$0xff]  ;;  %v1503_v55 = vld [vmem:[%s1959_s8 + $0xc8] sm:$0xff] }
  0x3e   : > { %v1483_v56 = vld [vmem:[%s1959_s8 + $0x28] sm:$0xff]  ;;  %v1490_v57 = vld [vmem:[%s1959_s8 + $0x60] sm:$0xff]  ;;  %v1497_v58 = vld [vmem:[%s1959_s8 + $0x98] sm:$0xff] }
  0x3f   : > { %v1504_v59 = vld [vmem:[%s1959_s8 + $0xd0] sm:$0xff]  ;;  %v1491_v61 = vld [vmem:[%s1959_s8 + $0x68] sm:$0xff]  ;;  %v1498_v62 = vld [vmem:[%s1959_s8 + $0xa0] sm:$0xff] }
  0x40   : > { %752 = vmatpush.bf16.msra.mxu0 %v1506_v35  ;;  %1552 = vmatpush.bf16.msra.mxu1 %v1506_v35  ;;  %v1484_v60 = vld [vmem:[%s1959_s8 + $0x30] sm:$0xff]  ;;  %v1505_v63 = vld [vmem:[%s1959_s8 + $0xd8] sm:$0xff]  ;;  %v2020_v0 = vld [vmem:[%s2115_s2] ss:$0 sm:$0xff] }
  0x41   : > { %1553 = vmatpush.bf16.msra.mxu2 %v1506_v35  ;;  %1554 = vmatpush.bf16.msra.mxu3 %v1506_v35 }
  0x43   : > { %1447 = vmatmul.msk.bf16.vlgmr.msra.gmra.mxu0 %vm653_vm2, %v1478_v36  ;;  %1454 = vmatmul.msk.bf16.vlgmr.msra.gmra.mxu1 %vm653_vm2, %v1485_v37 }
  0x44   : > { %1461 = vmatmul.msk.bf16.vlgmr.msra.gmra.mxu2 %vm653_vm2, %v1492_v38  ;;  %1468 = vmatmul.msk.bf16.vlgmr.msra.gmra.mxu3 %vm653_vm2, %v1499_v39 }
  0x53   : > { %1448 = vmatmul.msk.bf16.gmra.mxu0 %vm653_vm2, %v1479_v40  ;;  %1455 = vmatmul.msk.bf16.gmra.mxu1 %vm653_vm2, %v1486_v41 }
  0x54   : > { %1462 = vmatmul.msk.bf16.gmra.mxu2 %vm653_vm2, %v1493_v42  ;;  %1469 = vmatmul.msk.bf16.gmra.mxu3 %vm653_vm2, %v1500_v43 }
  0x63   : > { %1449 = vmatmul.msk.bf16.gmra.mxu0 %vm653_vm2, %v1480_v44  ;;  %1456 = vmatmul.msk.bf16.gmra.mxu1 %vm653_vm2, %v1487_v45 }
  0x64   : > { %1463 = vmatmul.msk.bf16.gmra.mxu2 %vm653_vm2, %v1494_v46  ;;  %1470 = vmatmul.msk.bf16.gmra.mxu3 %vm653_vm2, %v1501_v47 }
  0x73   : > { %1450 = vmatmul.msk.bf16.gmra.mxu0 %vm653_vm2, %v1481_v48  ;;  %1457 = vmatmul.msk.bf16.gmra.mxu1 %vm653_vm2, %v1488_v49 }
  0x74   : > { %1464 = vmatmul.msk.bf16.gmra.mxu2 %vm653_vm2, %v1495_v50  ;;  %1471 = vmatmul.msk.bf16.gmra.mxu3 %vm653_vm2, %v1502_v51 }
  0x83   : > { %1451 = vmatmul.msk.bf16.gmra.mxu0 %vm653_vm2, %v1482_v52  ;;  %1458 = vmatmul.msk.bf16.gmra.mxu1 %vm653_vm2, %v1489_v53 }
  0x84   : > { %1465 = vmatmul.msk.bf16.gmra.mxu2 %vm653_vm2, %v1496_v54  ;;  %1472 = vmatmul.msk.bf16.gmra.mxu3 %vm653_vm2, %v1503_v55 }
  0x93   : > { %1452 = vmatmul.msk.bf16.gmra.mxu0 %vm653_vm2, %v1483_v56  ;;  %1459 = vmatmul.msk.bf16.gmra.mxu1 %vm653_vm2, %v1490_v57 }
  0x94   : > { %1466 = vmatmul.msk.bf16.gmra.mxu2 %vm653_vm2, %v1497_v58  ;;  %1473 = vmatmul.msk.bf16.gmra.mxu3 %vm653_vm2, %v1504_v59 }
  0xa3   : > { %1453 = vmatmul.msk.bf16.gmra.mxu0 %vm653_vm2, %v1484_v60  ;;  %1460 = vmatmul.msk.bf16.gmra.mxu1 %vm653_vm2, %v1491_v61 }
  0xa4   : > { %1467 = vmatmul.msk.bf16.gmra.mxu2 %vm653_vm2, %v1498_v62  ;;  %1474 = vmatmul.msk.bf16.gmra.mxu3 %vm653_vm2, %v1505_v63 }
  0xc0   : > { %v754_v1 = vpop.f32.mrf.mxu0  ;;  %v789_v2 = vpop.f32.mrf.mxu1 }
  0xc1   : > { %v755_v3 = vadd.f32 %v2020_v0, %v754_v1  ;;  %v790_v4 = vadd.f32 %v2020_v0, %v789_v2 }
  0xc3   : > { %v894_v5 = vsub.f32 0.0, %v755_v3  ;;  %v908_v6 = vsub.f32 0.0, %v790_v4 }
  0xc5   : > { %v950_v7 = vmul.f32 1.442695, %v894_v5  ;;  %v978_v8 = vmul.f32 1.442695, %v908_v6 }
  0xc7   : > { %1583 = vpow2.f32 %v950_v7  ;;  %v824_v9 = vpop.f32.mrf.mxu2  ;;  %v859_v10 = vpop.f32.mrf.mxu3 }
  0xc8   : > { %1585 = vpow2.f32 %v978_v8  ;;  %v825_v11 = vadd.f32 %v2020_v0, %v824_v9  ;;  %v860_v12 = vadd.f32 %v2020_v0, %v859_v10  ;;  %v756_v13 = vpop.f32.mrf.mxu0  ;;  %v791_v14 = vpop.f32.mrf.mxu1 }
  0xc9   : > { %v757_v15 = vadd.f32 %v2020_v0, %v756_v13  ;;  %v792_v16 = vadd.f32 %v2020_v0, %v791_v14 }
  0xca   : > { %v922_v17 = vsub.f32 0.0, %v825_v11  ;;  %v936_v18 = vsub.f32 0.0, %v860_v12 }
  0xcb   : > { %v895_v19 = vsub.f32 0.0, %v757_v15  ;;  %v909_v20 = vsub.f32 0.0, %v792_v16 }
  0xcc   : > { %v1006_v21 = vmul.f32 1.442695, %v922_v17  ;;  %v1034_v22 = vmul.f32 1.442695, %v936_v18 }
  0xcd   : > { %v1584_v23 = vpop.eup %1583  ;;  %v952_v26 = vmul.f32 1.442695, %v895_v19  ;;  %v980_v28 = vmul.f32 1.442695, %v909_v20 }
  0xce   : > { %v1586_v24 = vpop.eup %1585  ;;  %v1062_v25 = vadd.f32 1.0, %v1584_v23  ;;  %1587 = vpow2.f32 %v1006_v21 }
  0xcf   : > { %v1076_v27 = vadd.f32 1.0, %v1586_v24  ;;  %1589 = vpow2.f32 %v1034_v22  ;;  %v826_v29 = vpop.f32.mrf.mxu2  ;;  %v861_v30 = vpop.f32.mrf.mxu3 }
  0xd0   : > { %1591 = vrcp.f32 %v1062_v25  ;;  %v827_v31 = vadd.f32 %v2020_v0, %v826_v29  ;;  %v862_v32 = vadd.f32 %v2020_v0, %v861_v30  ;;  %v759_v33 = vpop.f32.mrf.mxu0  ;;  %v794_v34 = vpop.f32.mrf.mxu1 }
  0xd1   : > { %1593 = vrcp.f32 %v1076_v27  ;;  %v760_v35 = vadd.f32 %v2020_v0, %v759_v33  ;;  %v795_v36 = vadd.f32 %v2020_v0, %v794_v34 }
  0xd2   : > { %1595 = vpow2.f32 %v952_v26  ;;  %v923_v37 = vsub.f32 0.0, %v827_v31  ;;  %v937_v38 = vsub.f32 0.0, %v862_v32 }
  0xd3   : > { %1597 = vpow2.f32 %v980_v28  ;;  %v896_v39 = vsub.f32 0.0, %v760_v35  ;;  %v910_v40 = vsub.f32 0.0, %v795_v36 }
  0xd4   : > { %v1588_v41 = vpop.eup %1587  ;;  %v1008_v42 = vmul.f32 1.442695, %v923_v37  ;;  %v1036_v45 = vmul.f32 1.442695, %v937_v38 }
  0xd5   : > { %v1590_v43 = vpop.eup %1589  ;;  %v1090_v44 = vadd.f32 1.0, %v1588_v41  ;;  %v954_v48 = vmul.f32 1.442695, %v896_v39  ;;  %v982_v50 = vmul.f32 1.442695, %v910_v40 }
  0xd6   : > { %v1592_v46 = vpop.eup %1591  ;;  %v1104_v47 = vadd.f32 1.0, %v1590_v43  ;;  %1599 = vpow2.f32 %v1008_v42 }
  0xd7   : > { %v1594_v49 = vpop.eup %1593  ;;  %1601 = vrcp.f32 %v1090_v44  ;;  %v829_v51 = vpop.f32.mrf.mxu2 }
  0xd8   : > { %v864_v52 = vpop.f32.mrf.mxu3  ;;  %v1596_v53 = vpop.eup %1595  ;;  %v1174_v54 = vadd.f32 %v1594_v49, %v1592_v46  ;;  %1603 = vrcp.f32 %v1104_v47  ;;  %v830_v55 = vadd.f32 %v2020_v0, %v829_v51 }
  0xd9   : > { %v865_v56 = vadd.f32 %v2020_v0, %v864_v52  ;;  %v761_v57 = vpop.f32.mrf.mxu0  ;;  %v796_v58 = vpop.f32.mrf.mxu1  ;;  %v1063_v60 = vadd.f32 1.0, %v1596_v53  ;;  %1605 = vpow2.f32 %v1036_v45 }
  0xda   : > { %v1598_v59 = vpop.eup %1597  ;;  %v762_v61 = vadd.f32 %v2020_v0, %v761_v57  ;;  %v797_v62 = vadd.f32 %v2020_v0, %v796_v58  ;;  %1607 = vpow2.f32 %v954_v48  ;;  %v924_v1 = vsub.f32 0.0, %v830_v55 }
  0xdb   : > { %v1077_v63 = vadd.f32 1.0, %v1598_v59  ;;  %v938_v2 = vsub.f32 0.0, %v865_v56  ;;  %1609 = vrcp.f32 %v1063_v60 }
  0xdc   : > { %v897_v3 = vsub.f32 0.0, %v762_v61  ;;  %v1600_v4 = vpop.eup %1599  ;;  %v1010_v5 = vmul.f32 1.442695, %v924_v1  ;;  %v911_v7 = vsub.f32 0.0, %v797_v62 }
  0xdd   : > { %1611 = vrcp.f32 %v1077_v63  ;;  %v1038_v6 = vmul.f32 1.442695, %v938_v2  ;;  %v1602_v8 = vpop.eup %1601  ;;  %v1091_v9 = vadd.f32 1.0, %v1600_v4 }
  0xde   : > { %1613 = vpow2.f32 %v982_v50  ;;  %v956_v10 = vmul.f32 1.442695, %v897_v3  ;;  %v1604_v11 = vpop.eup %1603  ;;  %v1188_v12 = vadd.f32 %v1602_v8, %v1174_v54  ;;  %v984_v18 = vmul.f32 1.442695, %v911_v7 }
  0xdf   : > { %1615 = vpow2.f32 %v1010_v5  ;;  %v1606_v13 = vpop.eup %1605  ;;  %v831_v14 = vpop.f32.mrf.mxu2 }
  0xe0   : > { %1617 = vrcp.f32 %v1091_v9  ;;  %v866_v15 = vpop.f32.mrf.mxu3  ;;  %v1608_v16 = vpop.eup %1607  ;;  %v1105_v17 = vadd.f32 1.0, %v1606_v13  ;;  %v832_v19 = vadd.f32 %v2020_v0, %v831_v14  ;;  %v1202_v27 = vadd.f32 %v1604_v11, %v1188_v12 }
  0xe1   : > { %1619 = vpow2.f32 %v1038_v6  ;;  %v764_v20 = vpop.f32.mrf.mxu0  ;;  %v799_v21 = vpop.f32.mrf.mxu1  ;;  %v1064_v23 = vadd.f32 1.0, %v1608_v16  ;;  %v867_v24 = vadd.f32 %v2020_v0, %v866_v15 }
  0xe2   : > { %v1610_v22 = vpop.eup %1609  ;;  %1621 = vpow2.f32 %v956_v10  ;;  %v765_v25 = vadd.f32 %v2020_v0, %v764_v20  ;;  %v925_v28 = vsub.f32 0.0, %v832_v19  ;;  %v800_v29 = vadd.f32 %v2020_v0, %v799_v21 }
  0xe3   : > { %v1612_v26 = vpop.eup %1611  ;;  %1623 = vrcp.f32 %v1105_v17  ;;  %v939_v31 = vsub.f32 0.0, %v867_v24  ;;  %v1216_v40 = vmul.f32 0.25, %v1202_v27 }
  0xe4   : > { %v1614_v30 = vpop.eup %1613  ;;  %1625 = vrcp.f32 %v1064_v23  ;;  %v898_v32 = vsub.f32 0.0, %v765_v25  ;;  %v1175_v34 = vadd.f32 %v1612_v26, %v1610_v22  ;;  %v1012_v36 = vmul.f32 1.442695, %v925_v28 }
  0xe5   : > { %v1616_v33 = vpop.eup %1615  ;;  %v1078_v35 = vadd.f32 1.0, %v1614_v30  ;;  %1627 = vpow2.f32 %v984_v18  ;;  %v912_v42 = vsub.f32 0.0, %v800_v29  ;;  %v1040_v45 = vmul.f32 1.442695, %v939_v31 }
  0xe6   : > { %v1618_v37 = vpop.eup %1617  ;;  %v1092_v38 = vadd.f32 1.0, %v1616_v33  ;;  %v958_v46 = vmul.f32 1.442695, %v898_v32 }
  0xe7   : > { %v1620_v39 = vpop.eup %1619  ;;  %v1189_v41 = vadd.f32 %v1618_v37, %v1175_v34  ;;  %1629 = vrcp.f32 %v1078_v35  ;;  %v834_v47 = vpop.f32.mrf.mxu2  ;;  %v986_v60 = vmul.f32 1.442695, %v912_v42 }
  0xe8   : > { %v1622_v43 = vpop.eup %1621  ;;  %1631 = vrcp.f32 %v1092_v38  ;;  %v1106_v44 = vadd.f32 1.0, %v1620_v39  ;;  %v869_v48 = vpop.f32.mrf.mxu3  ;;  %v835_v51 = vadd.f32 %v2020_v0, %v834_v47 }
  0xe9   : > { %v1624_v49 = vpop.eup %1623  ;;  %v1065_v50 = vadd.f32 1.0, %v1622_v43  ;;  %1633 = vpow2.f32 %v1012_v36  ;;  %v870_v52 = vadd.f32 %v2020_v0, %v869_v48  ;;  %v766_v53 = vpop.f32.mrf.mxu0 }
  0xea   : > { %v801_v54 = vpop.f32.mrf.mxu1  ;;  %v1626_v55 = vpop.eup %1625  ;;  %v1203_v56 = vadd.f32 %v1624_v49, %v1189_v41  ;;  %1635 = vrcp.f32 %v1106_v44  ;;  %v767_v57 = vadd.f32 %v2020_v0, %v766_v53  ;;  %v926_v61 = vsub.f32 0.0, %v835_v51 }
  0xeb   : > { %v802_v58 = vadd.f32 %v2020_v0, %v801_v54  ;;  %v1628_v59 = vpop.eup %1627  ;;  %1637 = vrcp.f32 %v1065_v50  ;;  %v940_v62 = vsub.f32 0.0, %v870_v52 }
  0xec   : > { %v1217_v63 = vmul.f32 0.25, %v1203_v56  ;;  %v1079_v1 = vadd.f32 1.0, %v1628_v59  ;;  %1639 = vpow2.f32 %v1040_v45  ;;  %v899_v2 = vsub.f32 0.0, %v767_v57 }
  0xed   : > { %v1630_v3 = vpop.eup %1629  ;;  %1641 = vpow2.f32 %v958_v46  ;;  %v1014_v4 = vmul.f32 1.442695, %v926_v61  ;;  %v1042_v5 = vmul.f32 1.442695, %v940_v62  ;;  %v913_v6 = vsub.f32 0.0, %v802_v58 }
  0xee   : > { %v1632_v7 = vpop.eup %1631  ;;  %v1511_v8 = vpack.c.bf16 %v1217_v63, %v1216_v40  ;;  %v1176_v9 = vadd.f32 %v1630_v3, %v1626_v55  ;;  %1643 = vrcp.f32 %v1079_v1  ;;  %v960_v11 = vmul.f32 1.442695, %v899_v2 }
  0xef   : > { %v1634_v10 = vpop.eup %1633  ;;  %1645 = vpow2.f32 %v986_v60  ;;  %v988_v14 = vmul.f32 1.442695, %v913_v6  ;;  %v836_v15 = vpop.f32.mrf.mxu2 }
  0xf0   : > { %v1636_v12 = vpop.eup %1635  ;;  %1512 = vst [vmem:[%s2058_s17] sm:$0xff] %v1511_v8   ;;  %v1093_v13 = vadd.f32 1.0, %v1634_v10  ;;  %1647 = vpow2.f32 %v1014_v4  ;;  %v871_v16 = vpop.f32.mrf.mxu3  ;;  %v837_v18 = vadd.f32 %v2020_v0, %v836_v15  ;;  %v1190_v23 = vadd.f32 %v1632_v7, %v1176_v9 }
  0xf1   : > { %v1638_v17 = vpop.eup %1637  ;;  %1649 = vpow2.f32 %v1042_v5  ;;  %v872_v19 = vadd.f32 %v2020_v0, %v871_v16  ;;  %v769_v20 = vpop.f32.mrf.mxu0 }
  0xf2   : > { %v804_v21 = vpop.f32.mrf.mxu1  ;;  %v1640_v22 = vpop.eup %1639  ;;  %1651 = vrcp.f32 %v1093_v13  ;;  %v770_v24 = vadd.f32 %v2020_v0, %v769_v20  ;;  %v927_v28 = vsub.f32 0.0, %v837_v18  ;;  %v1204_v36 = vadd.f32 %v1636_v12, %v1190_v23 }
  0xf3   : > { %v805_v25 = vadd.f32 %v2020_v0, %v804_v21  ;;  %v1642_v26 = vpop.eup %1641  ;;  %v1107_v27 = vadd.f32 1.0, %v1640_v22  ;;  %1653 = vpow2.f32 %v960_v11  ;;  %v941_v29 = vsub.f32 0.0, %v872_v19 }
  0xf4   : > { %v1644_v30 = vpop.eup %1643  ;;  %v1066_v31 = vadd.f32 1.0, %v1642_v26  ;;  %1655 = vpow2.f32 %v988_v14  ;;  %v900_v32 = vsub.f32 0.0, %v770_v24  ;;  %v1016_v34 = vmul.f32 1.442695, %v927_v28 }
  0xf5   : > { %v1646_v33 = vpop.eup %1645  ;;  %1657 = vrcp.f32 %v1107_v27  ;;  %v914_v38 = vsub.f32 0.0, %v805_v25  ;;  %v1177_v40 = vadd.f32 %v1644_v30, %v1638_v17  ;;  %v1044_v42 = vmul.f32 1.442695, %v941_v29 }
  0xf6   : > { %v1648_v35 = vpop.eup %1647  ;;  %1659 = vrcp.f32 %v1066_v31  ;;  %v1080_v37 = vadd.f32 1.0, %v1646_v33  ;;  %v962_v45 = vmul.f32 1.442695, %v900_v32  ;;  %v1218_v5 = vmul.f32 0.25, %v1204_v36 }
  0xf7   : > { %v1650_v39 = vpop.eup %1649  ;;  %v1094_v41 = vadd.f32 1.0, %v1648_v35  ;;  %1661 = vpow2.f32 %v1016_v34  ;;  %v990_v46 = vmul.f32 1.442695, %v914_v38  ;;  %v839_v47 = vpop.f32.mrf.mxu2 }
  0xf8   : > { %v1652_v43 = vpop.eup %1651  ;;  %1663 = vrcp.f32 %v1080_v37  ;;  %v1108_v44 = vadd.f32 1.0, %v1650_v39  ;;  %v874_v48 = vpop.f32.mrf.mxu3  ;;  %v840_v51 = vadd.f32 %v2020_v0, %v839_v47 }
  0xf9   : > { %v1654_v49 = vpop.eup %1653  ;;  %v1191_v50 = vadd.f32 %v1652_v43, %v1177_v40  ;;  %1665 = vrcp.f32 %v1094_v41  ;;  %v875_v52 = vadd.f32 %v2020_v0, %v874_v48  ;;  %v771_v53 = vpop.f32.mrf.mxu0 }
  0xfa   : > { %v806_v54 = vpop.f32.mrf.mxu1  ;;  %v1656_v55 = vpop.eup %1655  ;;  %1667 = vrcp.f32 %v1108_v44  ;;  %v1067_v56 = vadd.f32 1.0, %v1654_v49  ;;  %v772_v57 = vadd.f32 %v2020_v0, %v771_v53  ;;  %v928_v61 = vsub.f32 0.0, %v840_v51 }
  0xfb   : > { %v807_v58 = vadd.f32 %v2020_v0, %v806_v54  ;;  %v1658_v59 = vpop.eup %1657  ;;  %v1081_v60 = vadd.f32 1.0, %v1656_v55  ;;  %1669 = vpow2.f32 %v1044_v42  ;;  %v942_v62 = vsub.f32 0.0, %v875_v52 }
  0xfc   : > { %v1660_v63 = vpop.eup %1659  ;;  %v1205_v1 = vadd.f32 %v1658_v59, %v1191_v50  ;;  %1671 = vrcp.f32 %v1067_v56  ;;  %v901_v2 = vsub.f32 0.0, %v772_v57  ;;  %v1018_v6 = vmul.f32 1.442695, %v928_v61 }
  0xfd   : > { %v915_v3 = vsub.f32 0.0, %v807_v58  ;;  %v1662_v4 = vpop.eup %1661  ;;  %1673 = vrcp.f32 %v1081_v60  ;;  %v1046_v10 = vmul.f32 1.442695, %v942_v62 }
  0xfe   : > { %v1664_v7 = vpop.eup %1663  ;;  %v1219_v8 = vmul.f32 0.25, %v1205_v1  ;;  %v1095_v9 = vadd.f32 1.0, %v1662_v4  ;;  %1675 = vpow2.f32 %v962_v45  ;;  %v964_v13 = vmul.f32 1.442695, %v901_v2 }
  0xff   : > { %v1666_v11 = vpop.eup %1665  ;;  %v1178_v12 = vadd.f32 %v1664_v7, %v1660_v63  ;;  %1677 = vpow2.f32 %v990_v46  ;;  %v992_v16 = vmul.f32 1.442695, %v915_v3  ;;  %v841_v17 = vpop.f32.mrf.mxu2 }
 0x100   : > { %v1668_v14 = vpop.eup %1667  ;;  %v1516_v15 = vpack.c.bf16 %v1219_v8, %v1218_v5  ;;  %1679 = vrcp.f32 %v1095_v9  ;;  %v876_v18 = vpop.f32.mrf.mxu3  ;;  %v842_v21 = vadd.f32 %v2020_v0, %v841_v17 }
 0x101   : > { %v1670_v19 = vpop.eup %1669  ;;  %v1192_v20 = vadd.f32 %v1666_v11, %v1178_v12  ;;  %1681 = vpow2.f32 %v1018_v6  ;;  %v877_v22 = vadd.f32 %v2020_v0, %v876_v18  ;;  %v774_v23 = vpop.f32.mrf.mxu0 }
 0x102   : > { %v809_v24 = vpop.f32.mrf.mxu1  ;;  %v1672_v25 = vpop.eup %1671  ;;  %1543 = vst [vmem:[%s2058_s17 + $0x8] sm:$0xff] %v1516_v15   ;;  %v1109_v26 = vadd.f32 1.0, %v1670_v19  ;;  %1683 = vpow2.f32 %v1046_v10  ;;  %v775_v27 = vadd.f32 %v2020_v0, %v774_v23  ;;  %v929_v30 = vsub.f32 0.0, %v842_v21 }
 0x103   : > { %v1674_v28 = vpop.eup %1673  ;;  %v1206_v29 = vadd.f32 %v1668_v14, %v1192_v20  ;;  %1685 = vpow2.f32 %v964_v13  ;;  %v810_v31 = vadd.f32 %v2020_v0, %v809_v24  ;;  %v943_v33 = vsub.f32 0.0, %v877_v22 }
 0x104   : > { %v1676_v32 = vpop.eup %1675  ;;  %1687 = vrcp.f32 %v1109_v26  ;;  %v902_v34 = vsub.f32 0.0, %v775_v27  ;;  %v1179_v36 = vadd.f32 %v1674_v28, %v1672_v25  ;;  %v1020_v38 = vmul.f32 1.442695, %v929_v30 }
 0x105   : > { %v1678_v35 = vpop.eup %1677  ;;  %v1068_v37 = vadd.f32 1.0, %v1676_v32  ;;  %1689 = vpow2.f32 %v992_v16  ;;  %v1220_v42 = vmul.f32 0.25, %v1206_v29  ;;  %v916_v44 = vsub.f32 0.0, %v810_v31 }
 0x106   : > { %v1680_v39 = vpop.eup %1679  ;;  %v1082_v40 = vadd.f32 1.0, %v1678_v35  ;;  %v1048_v47 = vmul.f32 1.442695, %v943_v33  ;;  %v966_v48 = vmul.f32 1.442695, %v902_v34 }
 0x107   : > { %v1682_v41 = vpop.eup %1681  ;;  %v1193_v43 = vadd.f32 %v1680_v39, %v1179_v36  ;;  %1691 = vrcp.f32 %v1068_v37  ;;  %v844_v49 = vpop.f32.mrf.mxu2  ;;  %v994_v3 = vmul.f32 1.442695, %v916_v44 }
 0x108   : > { %v1684_v45 = vpop.eup %1683  ;;  %1693 = vrcp.f32 %v1082_v40  ;;  %v1096_v46 = vadd.f32 1.0, %v1682_v41  ;;  %v879_v50 = vpop.f32.mrf.mxu3  ;;  %v845_v53 = vadd.f32 %v2020_v0, %v844_v49 }
 0x109   : > { %v1686_v51 = vpop.eup %1685  ;;  %v1110_v52 = vadd.f32 1.0, %v1684_v45  ;;  %1695 = vpow2.f32 %v1020_v38  ;;  %v880_v54 = vadd.f32 %v2020_v0, %v879_v50  ;;  %v776_v55 = vpop.f32.mrf.mxu0 }
 0x10a   : > { %v811_v56 = vpop.f32.mrf.mxu1  ;;  %v1688_v57 = vpop.eup %1687  ;;  %1697 = vrcp.f32 %v1096_v46  ;;  %v1069_v58 = vadd.f32 1.0, %v1686_v51  ;;  %v777_v59 = vadd.f32 %v2020_v0, %v776_v55  ;;  %v930_v63 = vsub.f32 0.0, %v845_v53 }
 0x10b   : > { %v812_v60 = vadd.f32 %v2020_v0, %v811_v56  ;;  %v1690_v61 = vpop.eup %1689  ;;  %v1207_v62 = vadd.f32 %v1688_v57, %v1193_v43  ;;  %1699 = vrcp.f32 %v1110_v52  ;;  %v944_v1 = vsub.f32 0.0, %v880_v54 }
 0x10c   : > { %1701 = vrcp.f32 %v1069_v58  ;;  %v1083_v2 = vadd.f32 1.0, %v1690_v61  ;;  %v903_v4 = vsub.f32 0.0, %v777_v59  ;;  %v1022_v7 = vmul.f32 1.442695, %v930_v63 }
 0x10d   : > { %v1692_v5 = vpop.eup %1691  ;;  %v1221_v6 = vmul.f32 0.25, %v1207_v62  ;;  %1703 = vpow2.f32 %v1048_v47  ;;  %v917_v8 = vsub.f32 0.0, %v812_v60  ;;  %v1050_v13 = vmul.f32 1.442695, %v944_v1 }
 0x10e   : > { %v1694_v9 = vpop.eup %1693  ;;  %1705 = vrcp.f32 %v1083_v2  ;;  %v968_v16 = vmul.f32 1.442695, %v903_v4 }
 0x10f   : > { %v1696_v10 = vpop.eup %1695  ;;  %v1521_v11 = vpack.c.bf16 %v1221_v6, %v1220_v42  ;;  %v1180_v12 = vadd.f32 %v1694_v9, %v1692_v5  ;;  %1707 = vpow2.f32 %v966_v48  ;;  %v846_v17 = vpop.f32.mrf.mxu2  ;;  %v996_v20 = vmul.f32 1.442695, %v917_v8 }
 0x110   : > { %v1698_v14 = vpop.eup %1697  ;;  %v1097_v15 = vadd.f32 1.0, %v1696_v10  ;;  %1709 = vpow2.f32 %v994_v3  ;;  %v881_v18 = vpop.f32.mrf.mxu3  ;;  %v847_v21 = vadd.f32 %v2020_v0, %v846_v17 }
 0x111   : > { %v1700_v19 = vpop.eup %1699  ;;  %1544 = vst [vmem:[%s2058_s17 + $0x10] sm:$0xff] %v1521_v11   ;;  %1711 = vpow2.f32 %v1022_v7  ;;  %v882_v22 = vadd.f32 %v2020_v0, %v881_v18  ;;  %v779_v23 = vpop.f32.mrf.mxu0  ;;  %v1194_v26 = vadd.f32 %v1698_v14, %v1180_v12 }
 0x112   : > { %v814_v24 = vpop.f32.mrf.mxu1  ;;  %v1702_v25 = vpop.eup %1701  ;;  %1713 = vrcp.f32 %v1097_v15  ;;  %v780_v27 = vadd.f32 %v2020_v0, %v779_v23  ;;  %v931_v29 = vsub.f32 0.0, %v847_v21 }
 0x113   : > { %v1704_v28 = vpop.eup %1703  ;;  %1715 = vpow2.f32 %v1050_v13  ;;  %v945_v30 = vsub.f32 0.0, %v882_v22  ;;  %v815_v34 = vadd.f32 %v2020_v0, %v814_v24  ;;  %v1208_v38 = vadd.f32 %v1700_v19, %v1194_v26 }
 0x114   : > { %v1706_v31 = vpop.eup %1705  ;;  %v1111_v32 = vadd.f32 1.0, %v1704_v28  ;;  %1717 = vpow2.f32 %v968_v16  ;;  %v904_v33 = vsub.f32 0.0, %v780_v27  ;;  %v1024_v36 = vmul.f32 1.442695, %v931_v29 }
 0x115   : > { %v1708_v35 = vpop.eup %1707  ;;  %1719 = vpow2.f32 %v996_v20  ;;  %v1181_v41 = vadd.f32 %v1706_v31, %v1702_v25  ;;  %v1052_v43 = vmul.f32 1.442695, %v945_v30  ;;  %v918_v47 = vsub.f32 0.0, %v815_v34 }
 0x116   : > { %v1710_v37 = vpop.eup %1709  ;;  %1721 = vrcp.f32 %v1111_v32  ;;  %v1070_v39 = vadd.f32 1.0, %v1708_v35  ;;  %v970_v46 = vmul.f32 1.442695, %v904_v33  ;;  %v1222_v12 = vmul.f32 0.25, %v1208_v38 }
 0x117   : > { %v1712_v40 = vpop.eup %1711  ;;  %v1084_v42 = vadd.f32 1.0, %v1710_v37  ;;  %1723 = vpow2.f32 %v1024_v36  ;;  %v849_v48 = vpop.f32.mrf.mxu2  ;;  %v998_v7 = vmul.f32 1.442695, %v918_v47 }
 0x118   : > { %v1714_v44 = vpop.eup %1713  ;;  %1725 = vrcp.f32 %v1070_v39  ;;  %v1098_v45 = vadd.f32 1.0, %v1712_v40  ;;  %v884_v49 = vpop.f32.mrf.mxu3  ;;  %v850_v52 = vadd.f32 %v2020_v0, %v849_v48 }
 0x119   : > { %v1716_v50 = vpop.eup %1715  ;;  %v1195_v51 = vadd.f32 %v1714_v44, %v1181_v41  ;;  %1727 = vrcp.f32 %v1084_v42  ;;  %v885_v53 = vadd.f32 %v2020_v0, %v884_v49  ;;  %v781_v54 = vpop.f32.mrf.mxu0 }
 0x11a   : > { %v816_v55 = vpop.f32.mrf.mxu1  ;;  %v1718_v56 = vpop.eup %1717  ;;  %1729 = vrcp.f32 %v1098_v45  ;;  %v1112_v57 = vadd.f32 1.0, %v1716_v50  ;;  %v782_v58 = vadd.f32 %v2020_v0, %v781_v54  ;;  %v932_v62 = vsub.f32 0.0, %v850_v52 }
 0x11b   : > { %v817_v59 = vadd.f32 %v2020_v0, %v816_v55  ;;  %v1720_v60 = vpop.eup %1719  ;;  %v1071_v61 = vadd.f32 1.0, %v1718_v56  ;;  %1731 = vpow2.f32 %v1052_v43  ;;  %v946_v63 = vsub.f32 0.0, %v885_v53 }
 0x11c   : > { %v1722_v1 = vpop.eup %1721  ;;  %1733 = vrcp.f32 %v1112_v57  ;;  %v1085_v2 = vadd.f32 1.0, %v1720_v60  ;;  %v905_v3 = vsub.f32 0.0, %v782_v58  ;;  %v1026_v10 = vmul.f32 1.442695, %v932_v62 }
 0x11d   : > { %v919_v4 = vsub.f32 0.0, %v817_v59  ;;  %v1724_v5 = vpop.eup %1723  ;;  %v1209_v6 = vadd.f32 %v1722_v1, %v1195_v51  ;;  %1735 = vrcp.f32 %v1071_v61  ;;  %v1054_v14 = vmul.f32 1.442695, %v946_v63 }
 0x11e   : > { %v1726_v8 = vpop.eup %1725  ;;  %1737 = vrcp.f32 %v1085_v2  ;;  %v1099_v9 = vadd.f32 1.0, %v1724_v5  ;;  %v972_v17 = vmul.f32 1.442695, %v905_v3 }
 0x11f   : > { %v1728_v11 = vpop.eup %1727  ;;  %v1223_v13 = vmul.f32 0.25, %v1209_v6  ;;  %1739 = vpow2.f32 %v970_v46  ;;  %v1000_v18 = vmul.f32 1.442695, %v919_v4  ;;  %v851_v19 = vpop.f32.mrf.mxu2 }
 0x120   : > { %v1730_v15 = vpop.eup %1729  ;;  %v1182_v16 = vadd.f32 %v1728_v11, %v1726_v8  ;;  %1741 = vrcp.f32 %v1099_v9  ;;  %v886_v20 = vpop.f32.mrf.mxu3  ;;  %v852_v23 = vadd.f32 %v2020_v0, %v851_v19 }
 0x121   : > { %v1732_v21 = vpop.eup %1731  ;;  %v1526_v22 = vpack.c.bf16 %v1223_v13, %v1222_v12  ;;  %1743 = vpow2.f32 %v998_v7  ;;  %v887_v24 = vadd.f32 %v2020_v0, %v886_v20  ;;  %v784_v25 = vpop.f32.mrf.mxu0 }
 0x122   : > { %v819_v26 = vpop.f32.mrf.mxu1  ;;  %v1734_v27 = vpop.eup %1733  ;;  %v1196_v28 = vadd.f32 %v1730_v15, %v1182_v16  ;;  %v1113_v29 = vadd.f32 1.0, %v1732_v21  ;;  %1745 = vpow2.f32 %v1026_v10  ;;  %v785_v30 = vadd.f32 %v2020_v0, %v784_v25 }
 0x123   : > { %v1736_v31 = vpop.eup %1735  ;;  %1545 = vst [vmem:[%s2058_s17 + $0x18] sm:$0xff] %v1526_v22   ;;  %1747 = vpow2.f32 %v1054_v14  ;;  %v933_v32 = vsub.f32 0.0, %v852_v23  ;;  %v947_v33 = vsub.f32 0.0, %v887_v24  ;;  %v820_v37 = vadd.f32 %v2020_v0, %v819_v26 }
 0x124   : > { %v1738_v34 = vpop.eup %1737  ;;  %v1210_v35 = vadd.f32 %v1734_v27, %v1196_v28  ;;  %1749 = vrcp.f32 %v1113_v29  ;;  %v906_v36 = vsub.f32 0.0, %v785_v30  ;;  %v1807_v27 = vld [vmem:[%s2115_s2] ss:$0 sm:$0xff] }
 0x125   : > { %v1740_v38 = vpop.eup %1739  ;;  %v1183_v39 = vadd.f32 %v1738_v34, %v1736_v31  ;;  %1751 = vpow2.f32 %v972_v17  ;;  %v1028_v40 = vmul.f32 1.442695, %v933_v32  ;;  %v1056_v41 = vmul.f32 1.442695, %v947_v33 }
 0x126   : > { %v1742_v42 = vpop.eup %1741  ;;  %v1072_v43 = vadd.f32 1.0, %v1740_v38  ;;  %1753 = vpow2.f32 %v1000_v18  ;;  %v1224_v47 = vmul.f32 0.25, %v1210_v35  ;;  %v920_v49 = vsub.f32 0.0, %v820_v37 }
 0x127   : > { %v1744_v44 = vpop.eup %1743  ;;  %v1197_v45 = vadd.f32 %v1742_v42, %v1183_v39  ;;  %1755 = vpow2.f32 %v1028_v40  ;;  %v854_v50 = vpop.f32.mrf.mxu2  ;;  %v974_v54 = vmul.f32 1.442695, %v906_v36 }
 0x128   : > { %v1746_v46 = vpop.eup %1745  ;;  %1757 = vrcp.f32 %v1072_v43  ;;  %v1086_v48 = vadd.f32 1.0, %v1744_v44  ;;  %v889_v51 = vpop.f32.mrf.mxu3  ;;  %v855_v55 = vadd.f32 %v2020_v0, %v854_v50  ;;  %v1002_v5 = vmul.f32 1.442695, %v920_v49 }
 0x129   : > { %v1748_v52 = vpop.eup %1747  ;;  %v1100_v53 = vadd.f32 1.0, %v1746_v46  ;;  %1759 = vpow2.f32 %v1056_v41  ;;  %v786_v56 = vpop.f32.mrf.mxu0  ;;  %v890_v60 = vadd.f32 %v2020_v0, %v889_v51 }
 0x12a   : > { %v821_v57 = vpop.f32.mrf.mxu1  ;;  %v1750_v58 = vpop.eup %1749  ;;  %1761 = vrcp.f32 %v1086_v48  ;;  %v1114_v59 = vadd.f32 1.0, %v1748_v52  ;;  %v787_v61 = vadd.f32 %v2020_v0, %v786_v56  ;;  %v934_v1 = vsub.f32 0.0, %v855_v55 }
 0x12b   : > { %v1752_v62 = vpop.eup %1751  ;;  %v1211_v63 = vadd.f32 %v1750_v58, %v1197_v45  ;;  %1763 = vrcp.f32 %v1100_v53  ;;  %v822_v2 = vadd.f32 %v2020_v0, %v821_v57  ;;  %v948_v6 = vsub.f32 0.0, %v890_v60 }
 0x12c   : > { %v1754_v3 = vpop.eup %1753  ;;  %1765 = vrcp.f32 %v1114_v59  ;;  %v1073_v4 = vadd.f32 1.0, %v1752_v62  ;;  %v907_v10 = vsub.f32 0.0, %v787_v61  ;;  %v1030_v15 = vmul.f32 1.442695, %v934_v1 }
 0x12d   : > { %v1756_v7 = vpop.eup %1755  ;;  %v1225_v8 = vmul.f32 0.25, %v1211_v63  ;;  %v1087_v9 = vadd.f32 1.0, %v1754_v3  ;;  %1767 = vpow2.f32 %v974_v54  ;;  %v921_v16 = vsub.f32 0.0, %v822_v2 }
 0x12e   : > { %v1758_v11 = vpop.eup %1757  ;;  %1769 = vrcp.f32 %v1073_v4  ;;  %v1101_v12 = vadd.f32 1.0, %v1756_v7  ;;  %v1058_v19 = vmul.f32 1.442695, %v948_v6  ;;  %v976_v24 = vmul.f32 1.442695, %v907_v10 }
 0x12f   : > { %v1760_v13 = vpop.eup %1759  ;;  %v1531_v14 = vpack.c.bf16 %v1225_v8, %v1224_v47  ;;  %1771 = vrcp.f32 %v1087_v9  ;;  %v856_v20 = vpop.f32.mrf.mxu2  ;;  %v1004_v30 = vmul.f32 1.442695, %v921_v16 }
 0x130   : > { %v1762_v17 = vpop.eup %1761  ;;  %1773 = vrcp.f32 %v1101_v12  ;;  %v1115_v18 = vadd.f32 1.0, %v1760_v13  ;;  %v891_v21 = vpop.f32.mrf.mxu3  ;;  %v857_v25 = vadd.f32 %v2020_v0, %v856_v20 }
 0x131   : > { %v1764_v22 = vpop.eup %1763  ;;  %1546 = vst [vmem:[%s2058_s17 + $0x20] sm:$0xff] %v1531_v14   ;;  %v1184_v23 = vadd.f32 %v1762_v17, %v1758_v11  ;;  %1775 = vpow2.f32 %v1002_v5  ;;  %v892_v28 = vadd.f32 %v1807_v27, %v891_v21 }
 0x132   : > { %v1766_v26 = vpop.eup %1765  ;;  %1777 = vrcp.f32 %v1115_v18  ;;  %v935_v31 = vsub.f32 0.0, %v857_v25 }
 0x133   : > { %v1768_v29 = vpop.eup %1767  ;;  %1779 = vpow2.f32 %v1030_v15  ;;  %v1198_v33 = vadd.f32 %v1764_v22, %v1184_v23  ;;  %v949_v35 = vsub.f32 0.0, %v892_v28 }
 0x134   : > { %v1770_v32 = vpop.eup %1769  ;;  %v1074_v34 = vadd.f32 1.0, %v1768_v29  ;;  %1781 = vpow2.f32 %v1058_v19  ;;  %v1032_v37 = vmul.f32 1.442695, %v935_v31 }
 0x135   : > { %v1772_v36 = vpop.eup %1771  ;;  %1783 = vpow2.f32 %v976_v24  ;;  %v1060_v39 = vmul.f32 1.442695, %v949_v35  ;;  %v1212_v42 = vadd.f32 %v1766_v26, %v1198_v33 }
 0x136   : > { %v1774_v0 = vpop.eup %1773  ;;  %v1185_v38 = vadd.f32 %v1772_v36, %v1770_v32  ;;  %1785 = vrcp.f32 %v1074_v34 }
 0x137   : > { %v1776_v40 = vpop.eup %1775  ;;  %1787 = vpow2.f32 %v1004_v30  ;;  %v1226_v52 = vmul.f32 0.25, %v1212_v42 }
 0x138   : > { %v1778_v41 = vpop.eup %1777  ;;  %v1199_v43 = vadd.f32 %v1774_v0, %v1185_v38  ;;  %v1088_v44 = vadd.f32 1.0, %v1776_v40  ;;  %1789 = vpow2.f32 %v1032_v37 }
 0x139   : > { %v1780_v45 = vpop.eup %1779  ;;  %1791 = vpow2.f32 %v1060_v39 }
 0x13a   : > { %v1782_v46 = vpop.eup %1781  ;;  %v1213_v47 = vadd.f32 %v1778_v41, %v1199_v43  ;;  %1793 = vrcp.f32 %v1088_v44  ;;  %v1102_v48 = vadd.f32 1.0, %v1780_v45 }
 0x13b   : > { %v1784_v49 = vpop.eup %1783  ;;  %v1116_v50 = vadd.f32 1.0, %v1782_v46 }
 0x13c   : > { %v1786_v51 = vpop.eup %1785  ;;  %v1227_v53 = vmul.f32 0.25, %v1213_v47  ;;  %1795 = vrcp.f32 %v1102_v48  ;;  %v1075_v54 = vadd.f32 1.0, %v1784_v49 }
 0x13d   : > { %v1788_v55 = vpop.eup %1787 }
 0x13e   : > { %v1790_v56 = vpop.eup %1789  ;;  %v1536_v57 = vpack.c.bf16 %v1227_v53, %v1226_v52  ;;  %1797 = vrcp.f32 %v1075_v54  ;;  %v1089_v58 = vadd.f32 1.0, %v1788_v55 }
 0x13f   : > { %v1792_v59 = vpop.eup %1791  ;;  %1799 = vrcp.f32 %v1116_v50  ;;  %v1103_v60 = vadd.f32 1.0, %v1790_v56 }
 0x140   : > { %v1794_v61 = vpop.eup %1793  ;;  %1547 = vst [vmem:[%s2058_s17 + $0x28] sm:$0xff] %v1536_v57   ;;  %1801 = vrcp.f32 %v1089_v58  ;;  %v1117_v62 = vadd.f32 1.0, %v1792_v59 }
 0x141   : > { %v1186_v63 = vadd.f32 %v1794_v61, %v1786_v51  ;;  %1803 = vrcp.f32 %v1103_v60 }
 0x142   : > { %v1796_v1 = vpop.eup %1795  ;;  %1805 = vrcp.f32 %v1117_v62 }
 0x143   : > { %v1200_v4 = vadd.f32 %v1796_v1, %v1186_v63 }
 0x144   : > { %v1798_v2 = vpop.eup %1797 }
 0x145   : > { %v1800_v3 = vpop.eup %1799 }
 0x146   : > { %v1802_v5 = vpop.eup %1801  ;;  %v1214_v8 = vadd.f32 %v1800_v3, %v1200_v4 }
 0x147   : > { %v1804_v6 = vpop.eup %1803  ;;  %v1187_v7 = vadd.f32 %v1802_v5, %v1798_v2 }
 0x148   : > { %v1806_v10 = vpop.eup %1805  ;;  %v1228_v12 = vmul.f32 0.25, %v1214_v8 }
 0x149   : > { %v1201_v9 = vadd.f32 %v1804_v6, %v1187_v7 }
 0x14b   : > { %v1215_v11 = vadd.f32 %v1806_v10, %v1201_v9 }
 0x14d   : > { %v1229_v13 = vmul.f32 0.25, %v1215_v11 }
 0x14f   : > { %v1541_v14 = vpack.c.bf16 %v1229_v13, %v1228_v12 }
 0x151   : > { %1548 = vst [vmem:[%s2058_s17 + $0x30] sm:$0xff] %v1541_v14  }
 0x152 PF: > { %p10_p9 = scmp.ge.s32.totalorder %s1870_s16, 9   ;;  %s2117_s12 = smov %s1826_s13 }
 0x153   : > { %s2118_s13 = smov %s1879_s19  ;;  %s2119_s14 = smov %s1870_s16 }
 0x154   :  { %12 = sbr.rel (!%p10_p9) target bundleno = 2 (0x2), region = 108 }

// kernel: forward.4
= control target key start
LH: loop header
LB: loop body
LE: loop exit
PB: predicated region body
PF: predicated region fallthrough
CT: control target
= control target key end

     0   :  { %s1820_s12 = smov 0   ;;  %s1822_s13 = smov 0   ;;  %s2290_s0 = inlined_call_operand.vmem [shape: bf16[4,400,150], index: 0, kind: input, shape index: {}]   ;;  %s2291_s1 = inlined_call_operand.vmem [shape: bf16[150,128], index: 1, kind: input, shape index: {}]   ;;  %s2292_s2 = inlined_call_operand.vmem [shape: f32[1,128], index: 2, kind: input, shape index: {}]   ;;  %s2293_s3 = inlined_call_operand.vmem [shape: bf16[400,128], index: 3, kind: output, shape index: {}]  }
   0x1   :  { %s1824_s14 = smov 0  }
   0x2 LB: > { %s1272_s15 = sadd.s32 4294967295, %s1798_s14   ;;  %s1837_s16 = sadd.s32 1, %s1798_s14   ;;  %s1798_s14 = sphi %s1824_s14, %s2296_s14   ;;  %s1794_s13 = sphi %s1822_s13, %s2295_s13   ;;  %s1790_s12 = sphi %s1820_s12, %s2294_s12  }
   0x3   : > { %s17_s17 = ssub.s32 %s1798_s14, %s1837_s16  ;;  %s20_s18 = sadd.s32 1, %s1794_s13 }
   0x4   : > { %p18_p0 = scmp.eq.s32.totalorder %s17_s17, 0  ;;  %p27_p1 = scmp.ne.s32.totalorder %s1794_s13, %s1790_s12 }
   0x5   : > { %p28_p2 = scmp.eq.s32.totalorder %s1798_s14, 0  ;;  %p1275_p4 = scmp.ge.s32.totalorder %s1798_s14, 5 }
   0x6   : > { %s1846_s19 = scalar_select %p18_p0, %s1794_s13, %s20_s18  }
   0x7   : > { %p29_p3 = por %p28_p2, %p27_p1  ;;  %127 = sbr.rel (%p1275_p4) target bundleno = 57 (0x39), region = 24 }
   0xc   : > { %130 = sbr.rel (!%p29_p3) target bundleno = 57 (0x39), region = 28  ;;  %s132_s20 = sand.u32 (%p29_p3), 1, %s1794_s13  }
   0xd   : > { %s1574_s21 = smul.u32 (%p29_p3), 80, %s1798_s14 }
   0xe   : > { %s1589_s22 = smul.u32 (%p29_p3), 320, %s132_s20 }
   0xf   : > { %s1854_s25 = scalar_lea.vmem (%p29_p3), %s2290_s0, %s1574_s21 }
  0x10   : > { %v245_v0 = vld [vmem:[%s1854_s25] sm:$0xff] (%p29_p3)  ;;  %v247_v1 = vld [vmem:[%s1854_s25 + $0x8] sm:$0xff] (%p29_p3)  ;;  %v249_v2 = vld [vmem:[%s1854_s25 + $0x10] sm:$0xff] (%p29_p3)  ;;  %s1859_s26 = scalar_lea.vmem (%p29_p3), [#allocation2], %s1589_s22 }
  0x11   : > { %246 = vst [vmem:[%s1859_s26] sm:$0xff] %v245_v0  ;;  %v251_v3 = vld [vmem:[%s1854_s25 + $0x18] sm:$0xff]  ;;  %v253_v4 = vld [vmem:[%s1854_s25 + $0x20] sm:$0xff]  ;;  %v255_v5 = vld [vmem:[%s1854_s25 + $0x28] sm:$0xff] }
  0x12   : > { %248 = vst [vmem:[%s1859_s26 + $0x8] sm:$0xff] %v247_v1  ;;  %v257_v6 = vld [vmem:[%s1854_s25 + $0x30] sm:$0xff]  ;;  %v259_v7 = vld [vmem:[%s1854_s25 + $0x38] sm:$0xff]  ;;  %v261_v8 = vld [vmem:[%s1854_s25 + $0x40] sm:$0xff] }
  0x13   : > { %250 = vst [vmem:[%s1859_s26 + $0x10] sm:$0xff] %v249_v2  ;;  %v263_v9 = vld [vmem:[%s1854_s25 + $0x48] sm:$0xff]  ;;  %v265_v10 = vld [vmem:[%s1854_s25 + $0x190] sm:$0xff]  ;;  %v267_v11 = vld [vmem:[%s1854_s25 + $0x198] sm:$0xff] }
  0x14   : > { %252 = vst [vmem:[%s1859_s26 + $0x18] sm:$0xff] %v251_v3  ;;  %v269_v12 = vld [vmem:[%s1854_s25 + $0x1a0] sm:$0xff]  ;;  %v271_v13 = vld [vmem:[%s1854_s25 + $0x1a8] sm:$0xff]  ;;  %v273_v14 = vld [vmem:[%s1854_s25 + $0x1b0] sm:$0xff] }
  0x15   : > { %254 = vst [vmem:[%s1859_s26 + $0x20] sm:$0xff] %v253_v4  ;;  %v275_v15 = vld [vmem:[%s1854_s25 + $0x1b8] sm:$0xff]  ;;  %v277_v16 = vld [vmem:[%s1854_s25 + $0x1c0] sm:$0xff]  ;;  %v279_v17 = vld [vmem:[%s1854_s25 + $0x1c8] sm:$0xff] }
  0x16   : > { %256 = vst [vmem:[%s1859_s26 + $0x28] sm:$0xff] %v255_v5  ;;  %v281_v18 = vld [vmem:[%s1854_s25 + $0x1d0] sm:$0xff]  ;;  %v283_v19 = vld [vmem:[%s1854_s25 + $0x1d8] sm:$0xff]  ;;  %v285_v20 = vld [vmem:[%s1854_s25 + $0x320] sm:$0xff] }
  0x17   : > { %258 = vst [vmem:[%s1859_s26 + $0x30] sm:$0xff] %v257_v6  ;;  %v287_v21 = vld [vmem:[%s1854_s25 + $0x328] sm:$0xff]  ;;  %v289_v22 = vld [vmem:[%s1854_s25 + $0x330] sm:$0xff]  ;;  %v291_v23 = vld [vmem:[%s1854_s25 + $0x338] sm:$0xff] }
  0x18   : > { %260 = vst [vmem:[%s1859_s26 + $0x38] sm:$0xff] %v259_v7  ;;  %v293_v24 = vld [vmem:[%s1854_s25 + $0x340] sm:$0xff]  ;;  %v295_v25 = vld [vmem:[%s1854_s25 + $0x348] sm:$0xff]  ;;  %v297_v26 = vld [vmem:[%s1854_s25 + $0x350] sm:$0xff] }
  0x19   : > { %262 = vst [vmem:[%s1859_s26 + $0x40] sm:$0xff] %v261_v8  ;;  %v299_v27 = vld [vmem:[%s1854_s25 + $0x358] sm:$0xff]  ;;  %v301_v28 = vld [vmem:[%s1854_s25 + $0x360] sm:$0xff]  ;;  %v303_v29 = vld [vmem:[%s1854_s25 + $0x368] sm:$0xff] }
  0x1a   : > { %264 = vst [vmem:[%s1859_s26 + $0x48] sm:$0xff] %v263_v9  ;;  %v305_v30 = vld [vmem:[%s1854_s25 + $0x4b0] sm:$0xff]  ;;  %v307_v31 = vld [vmem:[%s1854_s25 + $0x4b8] sm:$0xff]  ;;  %v309_v32 = vld [vmem:[%s1854_s25 + $0x4c0] sm:$0xff] }
  0x1b   : > { %266 = vst [vmem:[%s1859_s26 + $0x50] sm:$0xff] %v265_v10  ;;  %v311_v33 = vld [vmem:[%s1854_s25 + $0x4c8] sm:$0xff]  ;;  %v313_v34 = vld [vmem:[%s1854_s25 + $0x4d0] sm:$0xff]  ;;  %v315_v35 = vld [vmem:[%s1854_s25 + $0x4d8] sm:$0xff] }
  0x1c   : > { %268 = vst [vmem:[%s1859_s26 + $0x58] sm:$0xff] %v267_v11  ;;  %v317_v36 = vld [vmem:[%s1854_s25 + $0x4e0] sm:$0xff]  ;;  %v319_v37 = vld [vmem:[%s1854_s25 + $0x4e8] sm:$0xff]  ;;  %v321_v38 = vld [vmem:[%s1854_s25 + $0x4f0] sm:$0xff] }
  0x1d   : > { %270 = vst [vmem:[%s1859_s26 + $0x60] sm:$0xff] %v269_v12  ;;  %v323_v39 = vld [vmem:[%s1854_s25 + $0x4f8] sm:$0xff] }
  0x1e   : > { %272 = vst [vmem:[%s1859_s26 + $0x68] sm:$0xff] %v271_v13 }
  0x1f   : > { %274 = vst [vmem:[%s1859_s26 + $0x70] sm:$0xff] %v273_v14 }
  0x20   : > { %276 = vst [vmem:[%s1859_s26 + $0x78] sm:$0xff] %v275_v15 }
  0x21   : > { %278 = vst [vmem:[%s1859_s26 + $0x80] sm:$0xff] %v277_v16 }
  0x22   : > { %280 = vst [vmem:[%s1859_s26 + $0x88] sm:$0xff] %v279_v17 }
  0x23   : > { %282 = vst [vmem:[%s1859_s26 + $0x90] sm:$0xff] %v281_v18 }
  0x24   : > { %284 = vst [vmem:[%s1859_s26 + $0x98] sm:$0xff] %v283_v19 }
  0x25   : > { %286 = vst [vmem:[%s1859_s26 + $0xa0] sm:$0xff] %v285_v20 }
  0x26   : > { %288 = vst [vmem:[%s1859_s26 + $0xa8] sm:$0xff] %v287_v21 }
  0x27   : > { %290 = vst [vmem:[%s1859_s26 + $0xb0] sm:$0xff] %v289_v22 }
  0x28   : > { %292 = vst [vmem:[%s1859_s26 + $0xb8] sm:$0xff] %v291_v23 }
  0x29   : > { %294 = vst [vmem:[%s1859_s26 + $0xc0] sm:$0xff] %v293_v24 }
  0x2a   : > { %296 = vst [vmem:[%s1859_s26 + $0xc8] sm:$0xff] %v295_v25 }
  0x2b   : > { %298 = vst [vmem:[%s1859_s26 + $0xd0] sm:$0xff] %v297_v26 }
  0x2c   : > { %300 = vst [vmem:[%s1859_s26 + $0xd8] sm:$0xff] %v299_v27 }
  0x2d   : > { %302 = vst [vmem:[%s1859_s26 + $0xe0] sm:$0xff] %v301_v28 }
  0x2e   : > { %304 = vst [vmem:[%s1859_s26 + $0xe8] sm:$0xff] %v303_v29 }
  0x2f   : > { %306 = vst [vmem:[%s1859_s26 + $0xf0] sm:$0xff] %v305_v30 }
  0x30   : > { %308 = vst [vmem:[%s1859_s26 + $0xf8] sm:$0xff] %v307_v31 }
  0x31   : > { %310 = vst [vmem:[%s1859_s26 + $0x100] sm:$0xff] %v309_v32 }
  0x32   : > { %312 = vst [vmem:[%s1859_s26 + $0x108] sm:$0xff] %v311_v33 }
  0x33   : > { %314 = vst [vmem:[%s1859_s26 + $0x110] sm:$0xff] %v313_v34 }
  0x34   : > { %316 = vst [vmem:[%s1859_s26 + $0x118] sm:$0xff] %v315_v35 }
  0x35   : > { %318 = vst [vmem:[%s1859_s26 + $0x120] sm:$0xff] %v317_v36 }
  0x36   : > { %320 = vst [vmem:[%s1859_s26 + $0x128] sm:$0xff] %v319_v37 }
  0x37   : > { %322 = vst [vmem:[%s1859_s26 + $0x130] sm:$0xff] %v321_v38 }
  0x38   : > { %324 = vst [vmem:[%s1859_s26 + $0x138] sm:$0xff] %v323_v39 }
  0x39 PF: > { %p1278_p5 = scmp.ge.s32.totalorder %s1798_s14, 1  ;;  %p329_p6 = scmp.lt.s32.totalorder %s1798_s14, 6 }
  0x3b   : > { %p330_p7 = pnand %p1278_p5, %p329_p6 }
  0x3c   : > { %s336_s4 = sand.u32 (!%p330_p7), 1, %s1790_s12   ;;  %s2201_s30 = smul.u32 (!%p330_p7), 10, %s1272_s15 }
  0x3d   : > { %333 = sbr.rel (%p330_p7) target bundleno = 414 (0x19e), region = 66 }
  0x3e   : > { %s1590_s5 = smul.u32 (!%p330_p7), 320, %s336_s4  ;;  %p361_p8 = scmp.lt.s32.totalorder (!%p330_p7), %s2201_s30, 49 }
  0x40   : > { %s1956_s12 = scalar_lea.vmem (!%p330_p7), [#allocation2], %s1590_s5 }
  0x42   : > { %v1547_v40 = vld [vmem:[%s2291_s1 + $0x38] sm:$0xff]  ;;  %v425_v41 = vld [vmem:[%s2291_s1 + $0x48] sm:$0x7]  ;;  %vm728_vm0 = vcmask 1042432   ;;  %v1546_v43 = vld [vmem:[%s2291_s1 + $0x30] sm:$0xff]  ;;  %vm667_vm1 = vcmask 179200  }
  0x43   : > { %v647_v42 = vunpack.c.l.b16 %v425_v41  ;;  %732 = vmatpush.bf16.msra.mxu0 %v1547_v40  ;;  %1579 = vmatpush.bf16.msra.mxu2 %v1547_v40  ;;  %v1548_v46 = vld [vmem:[%s2291_s1 + $0x40] sm:$0xff]  ;;  %v1545_v47 = vld [vmem:[%s2291_s1 + $0x28] sm:$0xff]  ;;  %v1522_v50 = vld [vmem:[%s1956_s12 + $0xb4] sm:$0xf]  ;;  %s2298_s30 = smov (!%p361_p8, %s2201_s30), 49 }
  0x44   : > { %v1500_v48 = vld [vmem:[%s1956_s12 + $0x4] sm:$0xf]  ;;  %v1284_v49 = vld [vmem:[%s1956_s12 + $0x8] sm:$0xf0]  ;;  %v1372_v51 = vld [vmem:[%s1956_s12 + $0xb8] sm:$0xf0] }
  0x45   : > { %v657_v44 = vpack.c.b16 %v647_v42, %v647_v42  ;;  %v1287_v52 = vor.u32 %v1500_v48, %v1284_v49  ;;  %v1544_v53 = vld [vmem:[%s2291_s1 + $0x20] sm:$0xff]  ;;  %v1375_v54 = vor.u32 %v1522_v50, %v1372_v51  ;;  %v1543_v55 = vld [vmem:[%s2291_s1 + $0x18] sm:$0xff]  ;;  %v1542_v56 = vld [vmem:[%s2291_s1 + $0x10] sm:$0xff]  ;;  %s1279_s14 = sshll.u32 %s2298_s30, 2 }
  0x46   : > { %v1541_v57 = vld [vmem:[%s2291_s1 + $0x8] sm:$0xff]  ;;  %v1502_v58 = vld [vmem:[%s1956_s12 + $0x14] sm:$0xf]  ;;  %v1292_v59 = vld [vmem:[%s1956_s12 + $0x18] sm:$0xf0]  ;;  %s2243_s5 = scalar_lea.vmem %s2293_s3, %s1279_s14 }
  0x47   : > { %v730_v45 = vsel %vm728_vm0, %v657_v44, 0  ;;  %733 = vmatpush.bf16.msra.mxu0 %v1546_v43  ;;  %1580 = vmatpush.bf16.msra.mxu2 %v1546_v43  ;;  %v1524_v60 = vld [vmem:[%s1956_s12 + $0xc4] sm:$0xf]  ;;  %v1380_v61 = vld [vmem:[%s1956_s12 + $0xc8] sm:$0xf0]  ;;  %v1295_v62 = vor.u32 %v1502_v58, %v1292_v59 }
  0x48   : > { %847 = vmatpush.bf16.msra.mxu1 %v730_v45  ;;  %1587 = vmatpush.bf16.msra.mxu3 %v730_v45  ;;  %v1540_v63 = vld [vmem:[%s2291_s1] sm:$0xff]  ;;  %v1501_v1 = vld [vmem:[%s1956_s12 + $0x4] sm:$0xf0]  ;;  %v1383_v2 = vor.u32 %v1524_v60, %v1380_v61  ;;  %v1300_v8 = vld [vmem:[%s1956_s12 + $0x28] sm:$0xf0] }
  0x49   : > { %v1282_v0 = vld [vmem:[%s1956_s12] sm:$0xf]  ;;  %v1521_v4 = vld [vmem:[%s1956_s12 + $0xa4] sm:$0xf0]  ;;  %v1504_v7 = vld [vmem:[%s1956_s12 + $0x24] sm:$0xf] }
  0x4a   : > { %v1362_v3 = vld [vmem:[%s1956_s12 + $0xa0] sm:$0xf]  ;;  %v1283_v5 = vor.u32 %v1501_v1, %v1282_v0  ;;  %v1526_v9 = vld [vmem:[%s1956_s12 + $0xd4] sm:$0xf]  ;;  %v1388_v10 = vld [vmem:[%s1956_s12 + $0xd8] sm:$0xf0]  ;;  %v1303_v11 = vor.u32 %v1504_v7, %v1300_v8 }
  0x4b   : > { %734 = vmatpush.bf16.msra.mxu0 %v1545_v47  ;;  %1581 = vmatpush.bf16.msra.mxu2 %v1545_v47  ;;  %v1363_v6 = vor.u32 %v1521_v4, %v1362_v3  ;;  %v1290_v12 = vld [vmem:[%s1956_s12 + $0x10] sm:$0xf]  ;;  %v1503_v13 = vld [vmem:[%s1956_s12 + $0x14] sm:$0xf0]  ;;  %v1391_v14 = vor.u32 %v1526_v9, %v1388_v10  ;;  %v1506_v19 = vld [vmem:[%s1956_s12 + $0x34] sm:$0xf] }
  0x4c   : > { %848 = vmatpush.bf16.msra.mxu1 %v1548_v46  ;;  %1588 = vmatpush.bf16.msra.mxu3 %v1548_v46  ;;  %v1370_v15 = vld [vmem:[%s1956_s12 + $0xb0] sm:$0xf]  ;;  %v1523_v16 = vld [vmem:[%s1956_s12 + $0xb4] sm:$0xf0]  ;;  %v1291_v17 = vor.u32 %v1503_v13, %v1290_v12  ;;  %v1308_v20 = vld [vmem:[%s1956_s12 + $0x38] sm:$0xf0] }
  0x4d   : > { %v1371_v18 = vor.u32 %v1523_v16, %v1370_v15  ;;  %v1528_v21 = vld [vmem:[%s1956_s12 + $0xe4] sm:$0xf]  ;;  %v1396_v22 = vld [vmem:[%s1956_s12 + $0xe8] sm:$0xf0]  ;;  %v1311_v23 = vor.u32 %v1506_v19, %v1308_v20  ;;  %v1298_v24 = vld [vmem:[%s1956_s12 + $0x20] sm:$0xf] }
  0x4e   : > { %v1505_v25 = vld [vmem:[%s1956_s12 + $0x24] sm:$0xf0]  ;;  %v1399_v26 = vor.u32 %v1528_v21, %v1396_v22  ;;  %v1378_v27 = vld [vmem:[%s1956_s12 + $0xc0] sm:$0xf]  ;;  %v1508_v31 = vld [vmem:[%s1956_s12 + $0x44] sm:$0xf] }
  0x4f   : > { %1476 = vmatmul.msk.bf16.vlgmr.msra.gmra.mxu1 %vm667_vm1, %v1287_v52  ;;  %735 = vmatpush.bf16.msra.mxu0 %v1544_v53  ;;  %v1525_v28 = vld [vmem:[%s1956_s12 + $0xc4] sm:$0xf0]  ;;  %v1299_v29 = vor.u32 %v1505_v25, %v1298_v24  ;;  %v1316_v32 = vld [vmem:[%s1956_s12 + $0x48] sm:$0xf0]  ;;  %v1530_v33 = vld [vmem:[%s1956_s12 + $0xf4] sm:$0xf] }
  0x50   : > { %1487 = vmatmul.msk.bf16.vlgmr.msra.gmra.mxu3 %vm667_vm1, %v1375_v54  ;;  %1582 = vmatpush.bf16.msra.mxu2 %v1544_v53  ;;  %v1379_v30 = vor.u32 %v1525_v28, %v1378_v27  ;;  %v1404_v34 = vld [vmem:[%s1956_s12 + $0xf8] sm:$0xf0]  ;;  %v1319_v35 = vor.u32 %v1508_v31, %v1316_v32  ;;  %v1306_v36 = vld [vmem:[%s1956_s12 + $0x30] sm:$0xf]  ;;  %v1507_v37 = vld [vmem:[%s1956_s12 + $0x34] sm:$0xf0] }
  0x51   : > { %v1407_v38 = vor.u32 %v1530_v33, %v1404_v34  ;;  %v1386_v39 = vld [vmem:[%s1956_s12 + $0xd0] sm:$0xf]  ;;  %v1527_v40 = vld [vmem:[%s1956_s12 + $0xd4] sm:$0xf0]  ;;  %v1307_v41 = vor.u32 %v1507_v37, %v1306_v36  ;;  %v1510_v43 = vld [vmem:[%s1956_s12 + $0x54] sm:$0xf] }
  0x52   : > { %v1387_v42 = vor.u32 %v1527_v40, %v1386_v39  ;;  %v1324_v44 = vld [vmem:[%s1956_s12 + $0x58] sm:$0xf0]  ;;  %v1532_v45 = vld [vmem:[%s1956_s12 + $0x104] sm:$0xf]  ;;  %v1412_v46 = vld [vmem:[%s1956_s12 + $0x108] sm:$0xf0] }
  0x53   : > { %736 = vmatpush.bf16.msra.mxu0 %v1543_v55  ;;  %v1327_v47 = vor.u32 %v1510_v43, %v1324_v44  ;;  %v1314_v48 = vld [vmem:[%s1956_s12 + $0x40] sm:$0xf]  ;;  %v1509_v49 = vld [vmem:[%s1956_s12 + $0x44] sm:$0xf0]  ;;  %v1415_v50 = vor.u32 %v1532_v45, %v1412_v46  ;;  %v1534_v58 = vld [vmem:[%s1956_s12 + $0x114] sm:$0xf] }
  0x54   : > { %1583 = vmatpush.bf16.msra.mxu2 %v1543_v55  ;;  %v1394_v51 = vld [vmem:[%s1956_s12 + $0xe0] sm:$0xf]  ;;  %v1529_v52 = vld [vmem:[%s1956_s12 + $0xe4] sm:$0xf0]  ;;  %v1315_v53 = vor.u32 %v1509_v49, %v1314_v48  ;;  %v1512_v55 = vld [vmem:[%s1956_s12 + $0x64] sm:$0xf] }
  0x55   : > { %v1395_v54 = vor.u32 %v1529_v52, %v1394_v51  ;;  %v1420_v59 = vld [vmem:[%s1956_s12 + $0x118] sm:$0xf0]  ;;  %v1322_v60 = vld [vmem:[%s1956_s12 + $0x50] sm:$0xf]  ;;  %v1511_v61 = vld [vmem:[%s1956_s12 + $0x54] sm:$0xf0] }
  0x56   : > { %v1531_v0 = vld [vmem:[%s1956_s12 + $0xf4] sm:$0xf0]  ;;  %v1323_v1 = vor.u32 %v1511_v61, %v1322_v60  ;;  %v1514_v3 = vld [vmem:[%s1956_s12 + $0x74] sm:$0xf]  ;;  %v1340_v4 = vld [vmem:[%s1956_s12 + $0x78] sm:$0xf0] }
  0x57   : > { %737 = vmatpush.bf16.msra.mxu0 %v1542_v56  ;;  %v1428_v7 = vld [vmem:[%s1956_s12 + $0x128] sm:$0xf0]  ;;  %v1330_v8 = vld [vmem:[%s1956_s12 + $0x60] sm:$0xf]  ;;  %v1513_v9 = vld [vmem:[%s1956_s12 + $0x64] sm:$0xf0] }
  0x58   : > { %1584 = vmatpush.bf16.msra.mxu2 %v1542_v56  ;;  %v1332_v56 = vld [vmem:[%s1956_s12 + $0x68] sm:$0xf0]  ;;  %v1533_v12 = vld [vmem:[%s1956_s12 + $0x104] sm:$0xf0]  ;;  %v1331_v13 = vor.u32 %v1513_v9, %v1330_v8  ;;  %v1516_v15 = vld [vmem:[%s1956_s12 + $0x84] sm:$0xf] }
  0x59   : > { %v1348_v16 = vld [vmem:[%s1956_s12 + $0x88] sm:$0xf0]  ;;  %v1436_v19 = vld [vmem:[%s1956_s12 + $0x138] sm:$0xf0]  ;;  %v1338_v21 = vld [vmem:[%s1956_s12 + $0x70] sm:$0xf] }
  0x5a   : > { %v1515_v22 = vld [vmem:[%s1956_s12 + $0x74] sm:$0xf0]  ;;  %v1418_v24 = vld [vmem:[%s1956_s12 + $0x110] sm:$0xf]  ;;  %v1356_v31 = vld [vmem:[%s1956_s12 + $0x98] sm:$0xf0] }
  0x5b   : > { %738 = vmatpush.bf16.msra.mxu0 %v1541_v57  ;;  %v1535_v25 = vld [vmem:[%s1956_s12 + $0x114] sm:$0xf0]  ;;  %v1346_v34 = vld [vmem:[%s1956_s12 + $0x80] sm:$0xf]  ;;  %v1520_v48 = vld [vmem:[%s1956_s12 + $0xa4] sm:$0xf] }
  0x5c   : > { %1585 = vmatpush.bf16.msra.mxu2 %v1541_v57  ;;  %v1335_v57 = vor.u32 %v1512_v55, %v1332_v56  ;;  %v1419_v27 = vor.u32 %v1535_v25, %v1418_v24  ;;  %v2066_v36 = vld [vmem:[%s2292_s2] ss:$0 sm:$0xff]  ;;  %v1364_v49 = vld [vmem:[%s1956_s12 + $0xa8] sm:$0xf0]  ;;  %v1354_v55 = vld [vmem:[%s1956_s12 + $0x90] sm:$0xf] }
  0x5d   : > { %v1426_v37 = vld [vmem:[%s1956_s12 + $0x120] sm:$0xf]  ;;  %v1367_v52 = vor.u32 %v1520_v48, %v1364_v49  ;;  %v1519_v56 = vld [vmem:[%s1956_s12 + $0x94] sm:$0xf0] }
  0x5e   : > { %v1355_v60 = vor.u32 %v1519_v56, %v1354_v55 }
  0x5f   : > { %1477 = vmatmul.msk.bf16.gmra.mxu1 %vm667_vm1, %v1295_v62  ;;  %739 = vmatpush.bf16.msra.mxu0 %v1540_v63  ;;  %v1423_v62 = vor.u32 %v1534_v58, %v1420_v59  ;;  %v1539_v58 = vld [vmem:[%s1956_s12 + $0x134] sm:$0xf0] }
  0x60   : > { %1488 = vmatmul.msk.bf16.gmra.mxu3 %vm667_vm1, %v1383_v2  ;;  %1586 = vmatpush.bf16.msra.mxu2 %v1540_v63  ;;  %v1402_v63 = vld [vmem:[%s1956_s12 + $0xf0] sm:$0xf] }
  0x61   : > { %v1403_v2 = vor.u32 %v1531_v0, %v1402_v63 }
  0x62   : > { %740 = vmatmul.bf16.vlgmr.msra.gmra.mxu0 %v1283_v5  ;;  %v1343_v5 = vor.u32 %v1514_v3, %v1340_v4 }
  0x63   : > { %790 = vmatmul.bf16.vlgmr.msra.gmra.mxu2 %v1363_v6  ;;  %v1536_v6 = vld [vmem:[%s1956_s12 + $0x124] sm:$0xf] }
  0x64   : > { %v1431_v10 = vor.u32 %v1536_v6, %v1428_v7 }
  0x6f   : > { %1478 = vmatmul.msk.bf16.gmra.mxu1 %vm667_vm1, %v1303_v11  ;;  %v1410_v11 = vld [vmem:[%s1956_s12 + $0x100] sm:$0xf] }
  0x70   : > { %1489 = vmatmul.msk.bf16.gmra.mxu3 %vm667_vm1, %v1391_v14  ;;  %v1411_v14 = vor.u32 %v1533_v12, %v1410_v11 }
  0x72   : > { %745 = vmatmul.bf16.gmra.mxu0 %v1291_v17  ;;  %v1351_v17 = vor.u32 %v1516_v15, %v1348_v16 }
  0x73   : > { %795 = vmatmul.bf16.gmra.mxu2 %v1371_v18  ;;  %v1538_v18 = vld [vmem:[%s1956_s12 + $0x134] sm:$0xf] }
  0x7f   : > { %1479 = vmatmul.msk.bf16.gmra.mxu1 %vm667_vm1, %v1311_v23  ;;  %v1439_v23 = vor.u32 %v1538_v18, %v1436_v19 }
  0x80   : > { %1490 = vmatmul.msk.bf16.gmra.mxu3 %vm667_vm1, %v1399_v26  ;;  %v1339_v26 = vor.u32 %v1515_v22, %v1338_v21 }
  0x82   : > { %750 = vmatmul.bf16.gmra.mxu0 %v1299_v29 }
  0x83   : > { %800 = vmatmul.bf16.gmra.mxu2 %v1379_v30  ;;  %v1518_v30 = vld [vmem:[%s1956_s12 + $0x94] sm:$0xf] }
  0x84   : > { %v1359_v32 = vor.u32 %v1518_v30, %v1356_v31 }
  0x8f   : > { %1480 = vmatmul.msk.bf16.gmra.mxu1 %vm667_vm1, %v1319_v35  ;;  %v1517_v35 = vld [vmem:[%s1956_s12 + $0x84] sm:$0xf0] }
  0x90   : > { %1491 = vmatmul.msk.bf16.gmra.mxu3 %vm667_vm1, %v1407_v38  ;;  %v1537_v38 = vld [vmem:[%s1956_s12 + $0x124] sm:$0xf0]  ;;  %v1347_v39 = vor.u32 %v1517_v35, %v1346_v34 }
  0x92   : > { %755 = vmatmul.bf16.gmra.mxu0 %v1307_v41  ;;  %v1427_v41 = vor.u32 %v1537_v38, %v1426_v37 }
  0x93   : > { %805 = vmatmul.bf16.gmra.mxu2 %v1387_v42 }
  0x9f   : > { %1481 = vmatmul.msk.bf16.gmra.mxu1 %vm667_vm1, %v1327_v47 }
  0xa0   : > { %1492 = vmatmul.msk.bf16.gmra.mxu3 %vm667_vm1, %v1415_v50 }
  0xa2   : > { %760 = vmatmul.bf16.gmra.mxu0 %v1315_v53 }
  0xa3   : > { %810 = vmatmul.bf16.gmra.mxu2 %v1395_v54 }
  0xaf   : > { %1482 = vmatmul.msk.bf16.gmra.mxu1 %vm667_vm1, %v1335_v57  ;;  %v1434_v57 = vld [vmem:[%s1956_s12 + $0x130] sm:$0xf] }
  0xb0   : > { %1493 = vmatmul.msk.bf16.gmra.mxu3 %vm667_vm1, %v1423_v62  ;;  %v1435_v62 = vor.u32 %v1539_v58, %v1434_v57 }
  0xb2   : > { %765 = vmatmul.bf16.gmra.mxu0 %v1323_v1 }
  0xb3   : > { %815 = vmatmul.bf16.gmra.mxu2 %v1403_v2 }
  0xbf   : > { %1483 = vmatmul.msk.bf16.gmra.mxu1 %vm667_vm1, %v1343_v5 }
  0xc0   : > { %1494 = vmatmul.msk.bf16.gmra.mxu3 %vm667_vm1, %v1431_v10 }
  0xc2   : > { %770 = vmatmul.bf16.gmra.mxu0 %v1331_v13 }
  0xc3   : > { %820 = vmatmul.bf16.gmra.mxu2 %v1411_v14 }
  0xcc   : > { %v850_v20 = vpop.f32.mrf.mxu1 }
  0xcf   : > { %1484 = vmatmul.msk.bf16.gmra.mxu1 %vm667_vm1, %v1351_v17 }
  0xd0   : > { %1495 = vmatmul.msk.bf16.gmra.mxu3 %vm667_vm1, %v1439_v23 }
  0xd2   : > { %775 = vmatmul.bf16.gmra.mxu0 %v1339_v26 }
  0xd3   : > { %825 = vmatmul.bf16.gmra.mxu2 %v1419_v27  ;;  %v905_v29 = vpop.f32.mrf.mxu3 }
  0xd4   : > { %v852_v28 = vpop.f32.mrf.mxu1 }
  0xdb   : > { %v907_v43 = vpop.f32.mrf.mxu3 }
  0xdc   : > { %v855_v33 = vpop.f32.mrf.mxu1 }
  0xdf   : > { %1485 = vmatmul.msk.bf16.gmra.mxu1 %vm667_vm1, %v1359_v32  ;;  %v741_v40 = vpop.f32.mrf.mxu0 }
  0xe0   : > { %v742_v42 = vadd.f32 %v2066_v36, %v741_v40 }
  0xe2   : > { %v2072_v44 = vadd.f32 %v850_v20, %v742_v42  ;;  %780 = vmatmul.bf16.gmra.mxu0 %v1347_v39 }
  0xe3   : > { %830 = vmatmul.bf16.gmra.mxu2 %v1427_v41  ;;  %v910_v53 = vpop.f32.mrf.mxu3 }
  0xe4   : > { %v857_v45 = vpop.f32.mrf.mxu1 }
  0xe6   : > { %v2074_v46 = vpop.f32.mrf.mxu2 }
  0xe7   : > { %v743_v47 = vpop.f32.mrf.mxu0 }
  0xe8   : > { %v744_v50 = vadd.f32 %v2066_v36, %v743_v47 }
  0xea   : > { %v2079_v51 = vadd.f32 %v852_v28, %v744_v50 }
  0xeb   : > { %v912_v2 = vpop.f32.mrf.mxu3 }
  0xec   : > { %v860_v54 = vpop.f32.mrf.mxu1 }
  0xee   : > { %v2085_v59 = vpop.f32.mrf.mxu2 }
  0xef   : > { %1486 = vmatmul.msk.bf16.gmra.mxu1 %vm667_vm1, %v1367_v52  ;;  %v746_v61 = vpop.f32.mrf.mxu0 }
  0xf0   : > { %v747_v63 = vadd.f32 %v2066_v36, %v746_v61 }
  0xf2   : > { %v2089_v0 = vadd.f32 %v855_v33, %v747_v63  ;;  %785 = vmatmul.bf16.gmra.mxu0 %v1355_v60  ;;  %v950_v60 = vsub.f32 0.0, %v2072_v44 }
  0xf3   : > { %835 = vmatmul.bf16.gmra.mxu2 %v1435_v62  ;;  %v915_v11 = vpop.f32.mrf.mxu3 }
  0xf4   : > { %v862_v1 = vpop.f32.mrf.mxu1  ;;  %v990_v63 = vmul.f32 1.442695, %v950_v60 }
  0xf6   : > { %v796_v3 = vpop.f32.mrf.mxu2  ;;  %1616 = vpow2.f32 %v990_v63 }
  0xf7   : > { %v797_v4 = vadd.f32 %v2066_v36, %v796_v3  ;;  %v748_v5 = vpop.f32.mrf.mxu0 }
  0xf8   : > { %v749_v6 = vadd.f32 %v2066_v36, %v748_v5  ;;  %v952_v5 = vsub.f32 0.0, %v2089_v0 }
  0xf9   : > { %v2093_v7 = vadd.f32 %v905_v29, %v797_v4 }
  0xfa   : > { %v2095_v8 = vadd.f32 %v857_v45, %v749_v6 }
  0xfb   : > { %v917_v22 = vpop.f32.mrf.mxu3 }
  0xfc   : > { %v865_v9 = vpop.f32.mrf.mxu1 }
  0xfe   : > { %v798_v10 = vpop.f32.mrf.mxu2 }
  0xff   : > { %v799_v12 = vadd.f32 %v2066_v36, %v798_v10  ;;  %v751_v13 = vpop.f32.mrf.mxu0 }
 0x100   : > { %v752_v14 = vadd.f32 %v2066_v36, %v751_v13 }
 0x101   : > { %v2099_v15 = vadd.f32 %v907_v43, %v799_v12  ;;  %v972_v12 = vsub.f32 0.0, %v2093_v7 }
 0x102   : > { %v2101_v16 = vadd.f32 %v860_v54, %v752_v14  ;;  %v994_v14 = vmul.f32 1.442695, %v952_v5 }
 0x103   : > { %v920_v32 = vpop.f32.mrf.mxu3  ;;  %v1034_v0 = vmul.f32 1.442695, %v972_v12 }
 0x104   : > { %v867_v17 = vpop.f32.mrf.mxu1 }
 0x106   : > { %v801_v18 = vpop.f32.mrf.mxu2 }
 0x107   : > { %v802_v19 = vadd.f32 %v2066_v36, %v801_v18  ;;  %v753_v20 = vpop.f32.mrf.mxu0 }
 0x108   : > { %v754_v21 = vadd.f32 %v2066_v36, %v753_v20 }
 0x109   : > { %v2105_v23 = vadd.f32 %v910_v53, %v802_v19 }
 0x10a   : > { %v2107_v24 = vadd.f32 %v862_v1, %v754_v21  ;;  %v1617_v21 = vpop.eup %1616 }
 0x10b   : > { %v922_v42 = vpop.f32.mrf.mxu3 }
 0x10c   : > { %v870_v25 = vpop.f32.mrf.mxu1 }
 0x10e   : > { %v803_v26 = vpop.f32.mrf.mxu2 }
 0x10f   : > { %v804_v27 = vadd.f32 %v2066_v36, %v803_v26  ;;  %v756_v28 = vpop.f32.mrf.mxu0 }
 0x110   : > { %v757_v29 = vadd.f32 %v2066_v36, %v756_v28  ;;  %v1070_v28 = vadd.f32 1.0, %v1617_v21 }
 0x111   : > { %v2111_v30 = vadd.f32 %v912_v2, %v804_v27  ;;  %v951_v2 = vsub.f32 0.0, %v2079_v51 }
 0x112   : > { %v2113_v31 = vadd.f32 %v865_v9, %v757_v29 }
 0x113   : > { %v2127_v54 = vpop.f32.mrf.mxu3 }
 0x114   : > { %v872_v33 = vpop.f32.mrf.mxu1 }
 0x116   : > { %v806_v34 = vpop.f32.mrf.mxu2 }
 0x117   : > { %v807_v35 = vadd.f32 %v2066_v36, %v806_v34  ;;  %v758_v37 = vpop.f32.mrf.mxu0 }
 0x118   : > { %v759_v38 = vadd.f32 %v2066_v36, %v758_v37 }
 0x119   : > { %v2117_v39 = vadd.f32 %v915_v11, %v807_v35  ;;  %v992_v11 = vmul.f32 1.442695, %v951_v2  ;;  %v954_v35 = vsub.f32 0.0, %v2101_v16 }
 0x11a   : > { %v2119_v40 = vadd.f32 %v867_v17, %v759_v38  ;;  %v953_v17 = vsub.f32 0.0, %v2095_v8 }
 0x11b   : > { %v2140_v9 = vpop.f32.mrf.mxu3  ;;  %1618 = vpow2.f32 %v992_v11 }
 0x11c   : > { %v875_v41 = vpop.f32.mrf.mxu1  ;;  %1620 = vpow2.f32 %v994_v14  ;;  %v996_v7 = vmul.f32 1.442695, %v953_v17 }
 0x11e   : > { %v808_v43 = vpop.f32.mrf.mxu2 }
 0x11f   : > { %v809_v45 = vadd.f32 %v2066_v36, %v808_v43  ;;  %v761_v47 = vpop.f32.mrf.mxu0 }
 0x120   : > { %v762_v48 = vadd.f32 %v2066_v36, %v761_v47 }
 0x121   : > { %v2123_v49 = vadd.f32 %v917_v22, %v809_v45  ;;  %v973_v22 = vsub.f32 0.0, %v2099_v15 }
 0x122   : > { %v2125_v50 = vadd.f32 %v870_v25, %v762_v48 }
 0x123   : > { %v930_v27 = vpop.f32.mrf.mxu3  ;;  %v1036_v8 = vmul.f32 1.442695, %v973_v22 }
 0x124   : > { %v877_v52 = vpop.f32.mrf.mxu1 }
 0x126   : > { %v811_v53 = vpop.f32.mrf.mxu2 }
 0x127   : > { %v812_v55 = vadd.f32 %v2066_v36, %v811_v53  ;;  %v763_v56 = vpop.f32.mrf.mxu0  ;;  %v998_v53 = vmul.f32 1.442695, %v954_v35 }
 0x128   : > { %v764_v57 = vadd.f32 %v2066_v36, %v763_v56  ;;  %v955_v56 = vsub.f32 0.0, %v2107_v24 }
 0x129   : > { %v2131_v58 = vadd.f32 %v920_v32, %v812_v55 }
 0x12a   : > { %v2134_v61 = vadd.f32 %v872_v33, %v764_v57  ;;  %v1619_v33 = vpop.eup %1618  ;;  %v1000_v11 = vmul.f32 1.442695, %v955_v56 }
 0x12b   : > { %v1621_v34 = vpop.eup %1620  ;;  %v1071_v43 = vadd.f32 1.0, %v1619_v33 }
 0x12c   : > { %v880_v62 = vpop.f32.mrf.mxu1 }
 0x12e   : > { %v813_v1 = vpop.f32.mrf.mxu2 }
 0x12f   : > { %v814_v3 = vadd.f32 %v2066_v36, %v813_v1  ;;  %v766_v4 = vpop.f32.mrf.mxu0  ;;  %v932_v1 = vpop.f32.mrf.mxu3 }
 0x130   : > { %v767_v6 = vadd.f32 %v2066_v36, %v766_v4  ;;  %v975_v4 = vsub.f32 0.0, %v2111_v30 }
 0x131   : > { %v2142_v10 = vadd.f32 %v922_v42, %v814_v3 }
 0x132   : > { %v876_v44 = vadd.f32 %v875_v41, %v767_v6  ;;  %v974_v41 = vsub.f32 0.0, %v2105_v23  ;;  %v1040_v22 = vmul.f32 1.442695, %v975_v4 }
 0x134   : > { %v2145_v13 = vpop.f32.mrf.mxu1  ;;  %v960_v51 = vsub.f32 0.0, %v876_v44  ;;  %v1038_v16 = vmul.f32 1.442695, %v974_v41 }
 0x136   : > { %v1010_v18 = vmul.f32 1.442695, %v960_v51  ;;  %v2148_v19 = vpop.f32.mrf.mxu2  ;;  %v956_v51 = vsub.f32 0.0, %v2113_v31 }
 0x137   : > { %v768_v20 = vpop.f32.mrf.mxu0  ;;  %v935_v41 = vpop.f32.mrf.mxu3 }
 0x138   : > { %v769_v25 = vadd.f32 %v2066_v36, %v768_v20  ;;  %1622 = vpow2.f32 %v1010_v18 }
 0x139   : > { %1624 = vpow2.f32 %v1034_v0 }
 0x13a   : > { %v878_v26 = vadd.f32 %v877_v52, %v769_v25  ;;  %1626 = vpow2.f32 %v996_v7  ;;  %v1072_v52 = vadd.f32 1.0, %v1621_v34 }
 0x13b   : > { %1628 = vrcp.f32 %v1070_v28 }
 0x13c   : > { %v2152_v29 = vpop.f32.mrf.mxu1  ;;  %v961_v32 = vsub.f32 0.0, %v878_v26  ;;  %1630 = vpow2.f32 %v1036_v8  ;;  %v1002_v8 = vmul.f32 1.442695, %v956_v51 }
 0x13e   : > { %v1012_v37 = vmul.f32 1.442695, %v961_v32  ;;  %v2155_v38 = vpop.f32.mrf.mxu2  ;;  %v1623_v15 = vpop.eup %1622 }
 0x13f   : > { %v771_v42 = vpop.f32.mrf.mxu0  ;;  %v1080_v45 = vadd.f32 1.0, %v1623_v15  ;;  %v1625_v48 = vpop.eup %1624 }
 0x140   : > { %v772_v47 = vadd.f32 %v2066_v36, %v771_v42  ;;  %1632 = vpow2.f32 %v1012_v37  ;;  %v1627_v60 = vpop.eup %1626  ;;  %v1092_v23 = vadd.f32 1.0, %v1625_v48 }
 0x141   : > { %1634 = vrcp.f32 %v1080_v45  ;;  %v1629_v2 = vpop.eup %1628 }
 0x142   : > { %v881_v55 = vadd.f32 %v880_v62, %v772_v47  ;;  %1636 = vrcp.f32 %v1071_v43  ;;  %v1631_v3 = vpop.eup %1630  ;;  %v1073_v62 = vadd.f32 1.0, %v1627_v60 }
 0x143   : > { %1638 = vrcp.f32 %v1072_v52  ;;  %v1093_v0 = vadd.f32 1.0, %v1631_v3 }
 0x144   : > { %v2160_v57 = vpop.f32.mrf.mxu1  ;;  %v962_v63 = vsub.f32 0.0, %v881_v55  ;;  %1640 = vpow2.f32 %v998_v53 }
 0x145   : > { %1642 = vpow2.f32 %v1038_v16 }
 0x146   : > { %v1014_v5 = vmul.f32 1.442695, %v962_v63  ;;  %v821_v6 = vpop.f32.mrf.mxu2  ;;  %v1633_v44 = vpop.eup %1632  ;;  %1644 = vrcp.f32 %v1092_v23 }
 0x147   : > { %v822_v24 = vadd.f32 %v2066_v36, %v821_v6  ;;  %v773_v12 = vpop.f32.mrf.mxu0  ;;  %v1635_v14 = vpop.eup %1634  ;;  %v1081_v17 = vadd.f32 1.0, %v1633_v44  ;;  %v977_v44 = vsub.f32 0.0, %v2123_v49 }
 0x148   : > { %v774_v18 = vadd.f32 %v2066_v36, %v773_v12  ;;  %1646 = vpow2.f32 %v1014_v5  ;;  %v2166_v30 = vadd.f32 %v1635_v14, %v1629_v2  ;;  %v1637_v21 = vpop.eup %1636 }
 0x149   : > { %v931_v20 = vadd.f32 %v930_v27, %v822_v24  ;;  %1648 = vrcp.f32 %v1081_v17  ;;  %v2169_v7 = vpop.eup %1638  ;;  %v976_v27 = vsub.f32 0.0, %v2117_v39 }
 0x14a   : > { %v883_v25 = vadd.f32 %v2145_v13, %v774_v18  ;;  %1650 = vpow2.f32 %v1000_v11  ;;  %v1641_v31 = vpop.eup %1640  ;;  %v957_v13 = vsub.f32 0.0, %v2119_v40 }
 0x14b   : > { %v982_v26 = vsub.f32 0.0, %v931_v20  ;;  %1652 = vrcp.f32 %v1073_v62  ;;  %v1643_v33 = vpop.eup %1642  ;;  %v1074_v43 = vadd.f32 1.0, %v1641_v31  ;;  %v1042_v16 = vmul.f32 1.442695, %v976_v27 }
 0x14c   : > { %v2171_v28 = vpop.f32.mrf.mxu1  ;;  %v963_v32 = vsub.f32 0.0, %v883_v25  ;;  %1654 = vrcp.f32 %v1093_v0  ;;  %v2174_v35 = vpop.eup %1644  ;;  %v1094_v52 = vadd.f32 1.0, %v1643_v33  ;;  %v1004_v23 = vmul.f32 1.442695, %v957_v13 }
 0x14d   : > { %v1054_v34 = vmul.f32 1.442695, %v982_v26  ;;  %1656 = vpow2.f32 %v1040_v22  ;;  %v1044_v20 = vmul.f32 1.442695, %v977_v44  ;;  %v937_v22 = vpop.f32.mrf.mxu3  ;;  %v958_v13 = vsub.f32 0.0, %v2125_v50 }
 0x14e   : > { %v1016_v37 = vmul.f32 1.442695, %v963_v32  ;;  %v823_v15 = vpop.f32.mrf.mxu2  ;;  %v1647_v42 = vpop.eup %1646  ;;  %v978_v50 = vsub.f32 0.0, %v2131_v58 }
 0x14f   : > { %1658 = vpow2.f32 %v1054_v34  ;;  %v824_v45 = vadd.f32 %v2066_v36, %v823_v15  ;;  %v776_v47 = vpop.f32.mrf.mxu0  ;;  %v1649_v48 = vpop.eup %1648  ;;  %v1082_v53 = vadd.f32 1.0, %v1647_v42 }
 0x150   : > { %1660 = vpow2.f32 %v1002_v8  ;;  %v777_v39 = vadd.f32 %v2066_v36, %v776_v47  ;;  %v1651_v55 = vpop.eup %1650  ;;  %v2179_v40 = vadd.f32 %v1649_v48, %v1637_v21 }
 0x151   : > { %1662 = vpow2.f32 %v1016_v37  ;;  %v933_v56 = vadd.f32 %v932_v1, %v824_v45  ;;  %v2181_v60 = vpop.eup %1652  ;;  %v1075_v6 = vadd.f32 1.0, %v1651_v55 }
 0x152   : > { %1664 = vrcp.f32 %v1082_v53  ;;  %v886_v63 = vadd.f32 %v2152_v29, %v777_v39  ;;  %v2184_v2 = vpop.eup %1654  ;;  %v1006_v39 = vmul.f32 1.442695, %v958_v13 }
 0x153   : > { %1666 = vrcp.f32 %v1074_v43  ;;  %v983_v3 = vsub.f32 0.0, %v933_v56  ;;  %v1657_v5 = vpop.eup %1656 }
 0x154   : > { %v2186_v4 = vpop.f32.mrf.mxu1  ;;  %1668 = vrcp.f32 %v1094_v52  ;;  %v964_v1 = vsub.f32 0.0, %v886_v63  ;;  %v1095_v26 = vadd.f32 1.0, %v1657_v5  ;;  %v959_v5 = vsub.f32 0.0, %v2134_v61 }
 0x155   : > { %v1659_v62 = vpop.eup %1658  ;;  %1670 = vpow2.f32 %v1042_v16  ;;  %v1056_v11 = vmul.f32 1.442695, %v983_v3 }
 0x156   : > { %v1661_v24 = vpop.eup %1660  ;;  %1672 = vpow2.f32 %v1004_v23  ;;  %v1018_v12 = vmul.f32 1.442695, %v964_v1  ;;  %v826_v14 = vpop.f32.mrf.mxu2  ;;  %v1102_v51 = vadd.f32 1.0, %v1659_v62  ;;  %v1046_v62 = vmul.f32 1.442695, %v978_v50 }
 0x157   : > { %v1663_v29 = vpop.eup %1662  ;;  %1674 = vpow2.f32 %v1056_v11  ;;  %v827_v17 = vadd.f32 %v2066_v36, %v826_v14  ;;  %v778_v18 = vpop.f32.mrf.mxu0  ;;  %v1076_v33 = vadd.f32 1.0, %v1661_v24  ;;  %v817_v14 = vadd.f32 %v2066_v36, %v2148_v19 }
 0x158   : > { %v1665_v0 = vpop.eup %1664  ;;  %1676 = vrcp.f32 %v1075_v6  ;;  %v1083_v21 = vadd.f32 1.0, %v1663_v29  ;;  %v779_v49 = vadd.f32 %v2066_v36, %v778_v18  ;;  %v940_v24 = vpop.f32.mrf.mxu3  ;;  %v792_v50 = vadd.f32 %v2066_v36, %v2074_v46 }
 0x159   : > { %v2191_v25 = vpop.eup %1666  ;;  %v1152_v31 = vadd.f32 %v1665_v0, %v2169_v7  ;;  %1678 = vpow2.f32 %v1018_v12  ;;  %v936_v8 = vadd.f32 %v935_v41, %v827_v17 }
 0x15a   : > { %v2194_v32 = vpop.eup %1668  ;;  %1680 = vrcp.f32 %v1083_v21  ;;  %v888_v27 = vadd.f32 %v2160_v57, %v779_v49  ;;  %v819_v49 = vadd.f32 %v2066_v36, %v2155_v38 }
 0x15b   : > { %v1671_v34 = vpop.eup %1670  ;;  %1682 = vrcp.f32 %v1102_v51  ;;  %v1162_v37 = vadd.f32 %v2174_v35, %v1152_v31  ;;  %v984_v15 = vsub.f32 0.0, %v936_v8  ;;  %v926_v8 = vadd.f32 %v2127_v54, %v817_v14 }
 0x15c   : > { %v2203_v42 = vpop.f32.mrf.mxu1  ;;  %v1673_v7 = vpop.eup %1672  ;;  %1684 = vpow2.f32 %v1044_v20  ;;  %v965_v41 = vsub.f32 0.0, %v888_v27  ;;  %v1096_v53 = vadd.f32 1.0, %v1671_v34  ;;  %v1008_v20 = vmul.f32 1.442695, %v959_v5 }
 0x15d   : > { %v1675_v43 = vpop.eup %1674  ;;  %1686 = vrcp.f32 %v1095_v26  ;;  %v1058_v45 = vmul.f32 1.442695, %v984_v15  ;;  %v1077_v23 = vadd.f32 1.0, %v1673_v7 }
 0x15e   : > { %v2205_v57 = vpop.eup %1676  ;;  %1688 = vrcp.f32 %v1076_v33  ;;  %v1103_v47 = vadd.f32 1.0, %v1675_v43  ;;  %v1020_v35 = vmul.f32 1.442695, %v965_v41  ;;  %v828_v48 = vpop.f32.mrf.mxu2 }
 0x15f   : > { %v1679_v52 = vpop.eup %1678  ;;  %1690 = vpow2.f32 %v1058_v45  ;;  %v829_v55 = vadd.f32 %v2066_v36, %v828_v48  ;;  %v781_v16 = vpop.f32.mrf.mxu0 }
 0x160   : > { %v1681_v56 = vpop.eup %1680  ;;  %1692 = vrcp.f32 %v1103_v47  ;;  %v1084_v63 = vadd.f32 1.0, %v1679_v52  ;;  %v782_v3 = vadd.f32 %v2066_v36, %v781_v16  ;;  %v928_v47 = vadd.f32 %v2140_v9, %v819_v49  ;;  %v942_v16 = vpop.f32.mrf.mxu3 }
 0x161   : > { %v1683_v58 = vpop.eup %1682  ;;  %v1153_v6 = vadd.f32 %v1681_v56, %v2181_v60  ;;  %1694 = vpow2.f32 %v1020_v35  ;;  %v938_v44 = vadd.f32 %v937_v22, %v829_v55 }
 0x162   : > { %v1685_v1 = vpop.eup %1684  ;;  %1696 = vrcp.f32 %v1084_v63  ;;  %v891_v11 = vadd.f32 %v2171_v28, %v782_v3  ;;  %v1172_v28 = vadd.f32 %v1683_v58, %v1162_v37  ;;  %v980_v63 = vsub.f32 0.0, %v926_v8 }
 0x163   : > { %v2214_v12 = vpop.eup %1686  ;;  %1698 = vrcp.f32 %v1096_v53  ;;  %v1163_v61 = vadd.f32 %v2184_v2, %v1153_v6  ;;  %v985_v60 = vsub.f32 0.0, %v938_v44  ;;  %v1097_v0 = vadd.f32 1.0, %v1685_v1 }
 0x164   : > { %v2224_v29 = vpop.f32.mrf.mxu1  ;;  %v2226_v51 = vpop.eup %1688  ;;  %1700 = vpow2.f32 %v1006_v39  ;;  %v966_v17 = vsub.f32 0.0, %v891_v11  ;;  %v1182_v37 = vmul.f32 0.25, %v1172_v28  ;;  %v981_v58 = vsub.f32 0.0, %v928_v47 }
 0x165   : > { %v1691_v18 = vpop.eup %1690  ;;  %1702 = vrcp.f32 %v1077_v23  ;;  %v1060_v21 = vmul.f32 1.442695, %v985_v60  ;;  %v1050_v28 = vmul.f32 1.442695, %v980_v63 }
 0x166   : > { %v1693_v19 = vpop.eup %1692  ;;  %1704 = vpow2.f32 %v1046_v62  ;;  %v1104_v2 = vadd.f32 1.0, %v1691_v18  ;;  %v1022_v22 = vmul.f32 1.442695, %v966_v17  ;;  %v831_v26 = vpop.f32.mrf.mxu2 }
 0x167   : > { %v1695_v31 = vpop.eup %1694  ;;  %v1173_v33 = vadd.f32 %v1693_v19, %v1163_v61  ;;  %1706 = vpow2.f32 %v1060_v21  ;;  %v832_v27 = vadd.f32 %v2066_v36, %v831_v26  ;;  %v783_v34 = vpop.f32.mrf.mxu0  ;;  %v1052_v21 = vmul.f32 1.442695, %v981_v58 }
 0x168   : > { %v1697_v13 = vpop.eup %1696  ;;  %1708 = vrcp.f32 %v1104_v2  ;;  %v1085_v15 = vadd.f32 1.0, %v1695_v31  ;;  %v784_v7 = vadd.f32 %v2066_v36, %v783_v34 }
 0x169   : > { %v2234_v41 = vpop.eup %1698  ;;  %v1183_v38 = vmul.f32 0.25, %v1173_v33  ;;  %v1154_v43 = vadd.f32 %v1697_v13, %v2191_v25  ;;  %1710 = vpow2.f32 %v1022_v22  ;;  %v941_v45 = vadd.f32 %v940_v24, %v832_v27 }
 0x16a   : > { %v1701_v54 = vpop.eup %1700  ;;  %1712 = vrcp.f32 %v1085_v15  ;;  %v893_v35 = vadd.f32 %v2186_v4, %v784_v7  ;;  %v979_v25 = vsub.f32 0.0, %v2142_v10 }
 0x16b   : > { %v2246_v48 = vpop.eup %1702  ;;  %v1557_v52 = vpack.c.bf16 %v1183_v38, %v1182_v37  ;;  %v1164_v53 = vadd.f32 %v2194_v32, %v1154_v43  ;;  %v986_v39 = vsub.f32 0.0, %v941_v45  ;;  %1714 = vrcp.f32 %v1097_v0 }
 0x16c   : > { %v900_v46 = vpop.f32.mrf.mxu1  ;;  %v2250_v55 = vpop.eup %1704  ;;  %v967_v9 = vsub.f32 0.0, %v893_v35  ;;  %1716 = vpow2.f32 %v1008_v20  ;;  %v1048_v1 = vmul.f32 1.442695, %v979_v25  ;;  %v794_v20 = vadd.f32 %v2066_v36, %v2085_v59 }
 0x16d   : > { %v901_v56 = vadd.f32 %v900_v46, %v792_v50  ;;  %v1707_v23 = vpop.eup %1706  ;;  %1575 = vst [vmem:[%s2243_s5 + $0x8] sm:$0xff] %v1557_v52   ;;  %v1062_v4 = vmul.f32 1.442695, %v986_v39  ;;  %v1078_v27 = vadd.f32 1.0, %v1701_v54 }
 0x16e   : > { %v1709_v3 = vpop.eup %1708  ;;  %v1105_v5 = vadd.f32 1.0, %v1707_v23  ;;  %v1024_v10 = vmul.f32 1.442695, %v967_v9  ;;  %v833_v44 = vpop.f32.mrf.mxu2 }
 0x16f   : > { %v970_v6 = vsub.f32 0.0, %v901_v56  ;;  %v1711_v32 = vpop.eup %1710  ;;  %1718 = vpow2.f32 %v1062_v4  ;;  %v834_v62 = vadd.f32 %v2066_v36, %v833_v44  ;;  %v786_v11 = vpop.f32.mrf.mxu0  ;;  %v1174_v2 = vadd.f32 %v1709_v3, %v1164_v53 }
 0x170   : > { %v1713_v24 = vpop.eup %1712  ;;  %1720 = vrcp.f32 %v1105_v5  ;;  %v1086_v14 = vadd.f32 1.0, %v1711_v32  ;;  %v787_v60 = vadd.f32 %v2066_v36, %v786_v11 }
 0x171   : > { %v1030_v61 = vmul.f32 1.442695, %v970_v6  ;;  %v1155_v17 = vadd.f32 %v1713_v24, %v2205_v57  ;;  %1722 = vpow2.f32 %v1024_v10  ;;  %v943_v18 = vadd.f32 %v942_v16, %v834_v62  ;;  %v2256_v0 = vpop.eup %1714 }
 0x172   : > { %1724 = vrcp.f32 %v1086_v14  ;;  %v896_v19 = vadd.f32 %v2203_v42, %v787_v60  ;;  %v2261_v49 = vpop.eup %1716  ;;  %v945_v42 = vpop.f32.mrf.mxu3  ;;  %v1184_v43 = vmul.f32 0.25, %v1174_v2  ;;  %v1098_v16 = vadd.f32 1.0, %v2250_v55 }
 0x173   : > { %v1165_v22 = vadd.f32 %v2214_v12, %v1155_v17  ;;  %1726 = vpow2.f32 %v1030_v61  ;;  %v987_v26 = vsub.f32 0.0, %v943_v18 }
 0x174   : > { %v902_v31 = vpop.f32.mrf.mxu1  ;;  %1728 = vpow2.f32 %v1048_v1  ;;  %v968_v57 = vsub.f32 0.0, %v896_v19 }
 0x175   : > { %v903_v8 = vadd.f32 %v902_v31, %v794_v20  ;;  %v1719_v33 = vpop.eup %1718  ;;  %1730 = vpow2.f32 %v1050_v28  ;;  %v1064_v34 = vmul.f32 1.442695, %v987_v26  ;;  %v1079_v26 = vadd.f32 1.0, %v2261_v49 }
 0x176   : > { %v1721_v59 = vpop.eup %1720  ;;  %1732 = vpow2.f32 %v1052_v21  ;;  %v1106_v13 = vadd.f32 1.0, %v1719_v33  ;;  %v1026_v37 = vmul.f32 1.442695, %v968_v57  ;;  %v836_v7 = vpop.f32.mrf.mxu2 }
 0x177   : > { %v971_v15 = vsub.f32 0.0, %v903_v8  ;;  %v1723_v38 = vpop.eup %1722  ;;  %v1175_v12 = vadd.f32 %v1721_v59, %v1165_v22  ;;  %1734 = vpow2.f32 %v1064_v34  ;;  %v837_v45 = vadd.f32 %v2066_v36, %v836_v7  ;;  %v788_v50 = vpop.f32.mrf.mxu0 }
 0x178   : > { %v1725_v47 = vpop.eup %1724  ;;  %1736 = vrcp.f32 %v1106_v13  ;;  %v1087_v35 = vadd.f32 1.0, %v1723_v38  ;;  %v789_v25 = vadd.f32 %v2066_v36, %v788_v50 }
 0x179   : > { %v1032_v54 = vmul.f32 1.442695, %v971_v15  ;;  %v1727_v52 = vpop.eup %1726  ;;  %v1185_v53 = vmul.f32 0.25, %v1175_v12  ;;  %v1156_v39 = vadd.f32 %v1725_v47, %v2226_v51  ;;  %1738 = vpow2.f32 %v1026_v37 }
 0x17a   : > { %v946_v46 = vadd.f32 %v945_v42, %v837_v45  ;;  %v1729_v9 = vpop.eup %1728  ;;  %1740 = vrcp.f32 %v1087_v35  ;;  %v1090_v56 = vadd.f32 1.0, %v1727_v52  ;;  %v898_v23 = vadd.f32 %v2224_v29, %v789_v25  ;;  %v947_v14 = vpop.f32.mrf.mxu3 }
 0x17b   : > { %v1731_v63 = vpop.eup %1730  ;;  %v1562_v4 = vpack.c.bf16 %v1185_v53, %v1184_v43  ;;  %v1166_v3 = vadd.f32 %v2234_v41, %v1156_v39  ;;  %1742 = vpow2.f32 %v1032_v54  ;;  %v1099_v57 = vadd.f32 1.0, %v1729_v9 }
 0x17c   : > { %v988_v58 = vsub.f32 0.0, %v946_v46  ;;  %v1733_v5 = vpop.eup %1732  ;;  %1744 = vrcp.f32 %v1090_v56  ;;  %v969_v10 = vsub.f32 0.0, %v898_v23  ;;  %v1100_v29 = vadd.f32 1.0, %v1731_v63 }
 0x17d   : > { %v1735_v51 = vpop.eup %1734  ;;  %1746 = vrcp.f32 %v1078_v27  ;;  %1576 = vst [vmem:[%s2243_s5 + $0x10] sm:$0xff] %v1562_v4   ;;  %v1101_v18 = vadd.f32 1.0, %v1733_v5 }
 0x17e   : > { %v1066_v6 = vmul.f32 1.442695, %v988_v58  ;;  %v1737_v44 = vpop.eup %1736  ;;  %1748 = vrcp.f32 %v1098_v16  ;;  %v1107_v55 = vadd.f32 1.0, %v1735_v51  ;;  %v1028_v32 = vmul.f32 1.442695, %v969_v10  ;;  %v838_v1 = vpop.f32.mrf.mxu2 }
 0x17f   : > { %v1739_v62 = vpop.eup %1738  ;;  %v839_v11 = vadd.f32 %v2066_v36, %v838_v1 }
 0x180   : > { %1750 = vpow2.f32 %v1066_v6  ;;  %v1741_v41 = vpop.eup %1740  ;;  %v1088_v24 = vadd.f32 1.0, %v1739_v62 }
 0x181   : > { %1752 = vrcp.f32 %v1107_v55  ;;  %v1743_v61 = vpop.eup %1742  ;;  %v1157_v60 = vadd.f32 %v1741_v41, %v2246_v48  ;;  %v948_v28 = vadd.f32 %v947_v14, %v839_v11  ;;  %v1176_v48 = vadd.f32 %v1737_v44, %v1166_v3 }
 0x182   : > { %1754 = vpow2.f32 %v1028_v32  ;;  %v1745_v17 = vpop.eup %1744  ;;  %v1091_v20 = vadd.f32 1.0, %v1743_v61 }
 0x183   : > { %1756 = vrcp.f32 %v1088_v24  ;;  %v1747_v21 = vpop.eup %1746  ;;  %v1160_v19 = vadd.f32 %v1745_v17, %v2166_v30  ;;  %v1167_v2 = vadd.f32 %v2256_v0, %v1157_v60  ;;  %v989_v36 = vsub.f32 0.0, %v948_v28 }
 0x184   : > { %1758 = vrcp.f32 %v1100_v29  ;;  %v1749_v22 = vpop.eup %1748  ;;  %v1186_v37 = vmul.f32 0.25, %v1176_v48 }
 0x185   : > { %1760 = vrcp.f32 %v1091_v20  ;;  %v1068_v8 = vmul.f32 1.442695, %v989_v36 }
 0x186   : > { %v1751_v31 = vpop.eup %1750  ;;  %1762 = vrcp.f32 %v1101_v18 }
 0x187   : > { %v1753_v33 = vpop.eup %1752  ;;  %1764 = vpow2.f32 %v1068_v8  ;;  %v1108_v13 = vadd.f32 1.0, %v1751_v31 }
 0x188   : > { %v1755_v27 = vpop.eup %1754  ;;  %v1177_v34 = vadd.f32 %v1753_v33, %v1167_v2  ;;  %1766 = vrcp.f32 %v1079_v26 }
 0x189   : > { %v1757_v59 = vpop.eup %1756  ;;  %v1089_v30 = vadd.f32 1.0, %v1755_v27  ;;  %1768 = vrcp.f32 %v1099_v57 }
 0x18a   : > { %v1759_v0 = vpop.eup %1758  ;;  %v1187_v42 = vmul.f32 0.25, %v1177_v34  ;;  %v1158_v49 = vadd.f32 %v1757_v59, %v1747_v21 }
 0x18b   : > { %v1761_v15 = vpop.eup %1760  ;;  %1770 = vrcp.f32 %v1089_v30  ;;  %v1170_v7 = vadd.f32 %v1759_v0, %v1160_v19 }
 0x18c   : > { %v1567_v38 = vpack.c.bf16 %v1187_v42, %v1186_v37  ;;  %v1161_v43 = vadd.f32 %v1761_v15, %v2179_v40  ;;  %v1168_v12 = vadd.f32 %v1749_v22, %v1158_v49  ;;  %v1763_v45 = vpop.eup %1762  ;;  %1772 = vrcp.f32 %v1108_v13 }
 0x18d   : > { %v1765_v50 = vpop.eup %1764  ;;  %v1180_v52 = vmul.f32 0.25, %v1170_v7 }
 0x18e   : > { %1577 = vst [vmem:[%s2243_s5 + $0x18] sm:$0xff] %v1567_v38   ;;  %v1171_v47 = vadd.f32 %v1763_v45, %v1161_v43  ;;  %v1767_v35 = vpop.eup %1766  ;;  %v1109_v54 = vadd.f32 1.0, %v1765_v50 }
 0x18f   : > { %v1769_v25 = vpop.eup %1768 }
 0x190   : > { %v1181_v53 = vmul.f32 0.25, %v1171_v47  ;;  %1774 = vrcp.f32 %v1109_v54 }
 0x191   : > { %v1771_v39 = vpop.eup %1770 }
 0x192   : > { %v1552_v46 = vpack.c.bf16 %v1181_v53, %v1180_v52  ;;  %v1159_v9 = vadd.f32 %v1771_v39, %v1767_v35  ;;  %v1773_v16 = vpop.eup %1772 }
 0x193   : > { %v1178_v56 = vadd.f32 %v1773_v16, %v1168_v12 }
 0x194   : > { %1553 = vst [vmem:[%s2243_s5] sm:$0xff] %v1552_v46   ;;  %v1169_v40 = vadd.f32 %v1769_v25, %v1159_v9 }
 0x195   : > { %v1188_v4 = vmul.f32 0.25, %v1178_v56 }
 0x196   : > { %v1775_v23 = vpop.eup %1774 }
 0x197   : > { %v1179_v63 = vadd.f32 %v1775_v23, %v1169_v40 }
 0x199   : > { %v1189_v3 = vmul.f32 0.25, %v1179_v63 }
 0x19b   : > { %v1572_v58 = vpack.c.bf16 %v1189_v3, %v1188_v4 }
 0x19d   : > { %1578 = vst [vmem:[%s2243_s5 + $0x20] sm:$0xff] %v1572_v58  }
 0x19e PF: > { %p10_p9 = scmp.ge.s32.totalorder %s1837_s16, 7   ;;  %s2294_s12 = smov %s1794_s13 }
 0x19f   : > { %s2295_s13 = smov %s1846_s19  ;;  %s2296_s14 = smov %s1837_s16 }
 0x1a0   :  { %12 = sbr.rel (!%p10_p9) target bundleno = 2 (0x2), region = 105 }

// kernel: forward.5
= control target key start
LH: loop header
LB: loop body
LE: loop exit
PB: predicated region body
PF: predicated region fallthrough
CT: control target
= control target key end

     0   :  { %s902_s0 = inlined_call_operand.vmem [shape: bf16[2,400], index: 0, kind: input, shape index: {}]   ;;  %s903_s1 = inlined_call_operand.vmem [shape: bf16[400,128], index: 1, kind: input, shape index: {}]   ;;  %s904_s2 = inlined_call_operand.vmem [shape: f32[1,128], index: 2, kind: input, shape index: {}]   ;;  %s905_s3 = inlined_call_operand.vmem [shape: bf16[128,128], index: 3, kind: input, shape index: {}]   ;;  %s906_s4 = inlined_call_operand.vmem [shape: f32[1,128], index: 4, kind: input, shape index: {}]   ;;  %s907_s5 = inlined_call_operand.vmem [shape: bf16[128,128], index: 5, kind: input, shape index: {}]   ;;  %s908_s6 = inlined_call_operand.vmem [shape: f32[1,128], index: 6, kind: input, shape index: {}]   ;;  %s909_s7 = inlined_call_operand.hbm [shape: f32[2,128], index: 7, kind: output, shape index: {}]  }
   0x1   :  { %v655_v0 = vld [vmem:[%s903_s1 + $0x38] sm:$0xff]  ;;  %v654_v3 = vld [vmem:[%s903_s1 + $0x30] sm:$0xff]  ;;  %v653_v6 = vld [vmem:[%s903_s1 + $0x28] sm:$0xff] }
   0x2   :  { %v663_v1 = vld [vmem:[%s903_s1 + $0x78] sm:$0xff]  ;;  %245 = vmatpush.bf16.msra.mxu0 %v655_v0  ;;  %v662_v4 = vld [vmem:[%s903_s1 + $0x70] sm:$0xff]  ;;  %v661_v7 = vld [vmem:[%s903_s1 + $0x68] sm:$0xff] }
   0x3   :  { %v671_v2 = vld [vmem:[%s903_s1 + $0xb8] sm:$0xff]  ;;  %258 = vmatpush.bf16.msra.mxu1 %v663_v1  ;;  %v670_v5 = vld [vmem:[%s903_s1 + $0xb0] sm:$0xff]  ;;  %v672_v8 = vld [vmem:[%s903_s1 + $0xc0] sm:$0xff] }
   0x4   :  { %271 = vmatpush.bf16.msra.mxu2 %v671_v2  ;;  %v669_v9 = vld [vmem:[%s903_s1 + $0xa8] sm:$0xff]  ;;  %v28_v10 = vld [vmem:[%s902_s0] sm:$0xf]  ;;  %291 = vmatpush.bf16.msra.mxu3 %v672_v8 }
   0x5   :  { %84 = vst [vmem:[#allocation1] ss:$9 sm:$0xff] %v28_v10  ;;  %v652_v11 = vld [vmem:[%s903_s1 + $0x20] sm:$0xff] }
   0x6   :  { %246 = vmatpush.bf16.msra.mxu0 %v654_v3  ;;  %v660_v12 = vld [vmem:[%s903_s1 + $0x60] sm:$0xff] }
   0x7   :  { %259 = vmatpush.bf16.msra.mxu1 %v662_v4 }
   0x8   :  { %272 = vmatpush.bf16.msra.mxu2 %v670_v5 }
   0xa   :  { %247 = vmatpush.bf16.msra.mxu0 %v653_v6 }
   0xb   :  { %260 = vmatpush.bf16.msra.mxu1 %v661_v7 }
   0xc   :  { %12 = vsyncpa [#allocation3], 0  ;;  %273 = vmatpush.bf16.msra.mxu2 %v669_v9  ;;  %v668_v13 = vld [vmem:[%s903_s1 + $0xa0] sm:$0xff]  ;;  %vm242_vm0 = vcmask 130048   ;;  %v651_v14 = vld [vmem:[%s903_s1 + $0x18] sm:$0xff]  ;;  %s723_s15 = smov [#allocation2]  }
   0xd   :  { %v659_v15 = vld [vmem:[%s903_s1 + $0x58] sm:$0xff]  ;;  %v650_v18 = vld [vmem:[%s903_s1 + $0x10] sm:$0xff]  ;;  %v649_v21 = vld [vmem:[%s903_s1 + $0x8] sm:$0xff]  ;;  %s472_s16 = sshll.u32 %s723_s15, 4  ;;  %s473_s16 = int_to_ptr.vmem [resolvable:$true] %s472_s16 }
   0xe   :  { %248 = vmatpush.bf16.msra.mxu0 %v652_v11  ;;  %v667_v16 = vld [vmem:[%s903_s1 + $0x98] sm:$0xff]  ;;  %v658_v19 = vld [vmem:[%s903_s1 + $0x50] sm:$0xff]  ;;  %v657_v22 = vld [vmem:[%s903_s1 + $0x48] sm:$0xff] }
   0xf   :  { %261 = vmatpush.bf16.msra.mxu1 %v660_v12  ;;  %v88_v17 = vld [vmem:[#allocation1 + $0x1b] sm:$0xff]  ;;  %v666_v20 = vld [vmem:[%s903_s1 + $0x90] sm:$0xff]  ;;  %v665_v23 = vld [vmem:[%s903_s1 + $0x88] sm:$0xff] }
  0x10   :  { %274 = vmatpush.bf16.msra.mxu2 %v668_v13  ;;  %583 = vmatmul.msk.bf16.vlgmr.msra.gmra.mxu3 %vm242_vm0, %v88_v17  ;;  %v648_v24 = vld [vmem:[%s903_s1] sm:$0xff]  ;;  %v86_v28 = vld [vmem:[#allocation1 + $0x9] sm:$0xff]  ;;  %v87_v29 = vld [vmem:[#allocation1 + $0x12] sm:$0xff] }
  0x11   :  { %v656_v25 = vld [vmem:[%s903_s1 + $0x40] sm:$0xff]  ;;  %v680_v30 = vld [vmem:[%s905_s3 + $0x38] sm:$0xff]  ;;  %v679_v31 = vld [vmem:[%s905_s3 + $0x30] sm:$0xff] }
  0x12   :  { %249 = vmatpush.bf16.msra.mxu0 %v651_v14  ;;  %v664_v26 = vld [vmem:[%s903_s1 + $0x80] sm:$0xff]  ;;  %371 = vmatpush.bf16.msrb.mxu3 %v680_v30  ;;  %v678_v32 = vld [vmem:[%s905_s3 + $0x28] sm:$0xff]  ;;  %v676_v34 = vld [vmem:[%s905_s3 + $0x18] sm:$0xff] }
  0x13   :  { %262 = vmatpush.bf16.msra.mxu1 %v659_v15  ;;  %v85_v27 = vld [vmem:[#allocation1] sm:$0xff]  ;;  %v675_v36 = vld [vmem:[%s905_s3 + $0x10] sm:$0xff]  ;;  %v674_v37 = vld [vmem:[%s905_s3 + $0x8] sm:$0xff] }
  0x14   :  { %275 = vmatpush.bf16.msra.mxu2 %v667_v16  ;;  %v677_v33 = vld [vmem:[%s905_s3 + $0x20] sm:$0xff]  ;;  %v688_v44 = vld [vmem:[%s907_s5 + $0x38] sm:$0xff]  ;;  %v687_v46 = vld [vmem:[%s907_s5 + $0x30] sm:$0xff] }
  0x15   :  { %v673_v38 = vld [vmem:[%s905_s3] sm:$0xff]  ;;  %v686_v51 = vld [vmem:[%s907_s5 + $0x28] sm:$0xff]  ;;  %v684_v57 = vld [vmem:[%s907_s5 + $0x18] sm:$0xff] }
  0x16   :  { %250 = vmatpush.bf16.msra.mxu0 %v650_v18  ;;  %372 = vmatpush.bf16.msrb.mxu3 %v679_v31  ;;  %v690_v39 = vld [vmem:[%s904_s2] ss:$0 sm:$0xff]  ;;  %v683_v58 = vld [vmem:[%s907_s5 + $0x10] sm:$0xff]  ;;  %v682_v61 = vld [vmem:[%s907_s5 + $0x8] sm:$0xff] }
  0x17   :  { %263 = vmatpush.bf16.msra.mxu1 %v658_v19  ;;  %v685_v54 = vld [vmem:[%s907_s5 + $0x20] sm:$0xff] }
  0x18   :  { %276 = vmatpush.bf16.msra.mxu2 %v666_v20  ;;  %v681_v0 = vld [vmem:[%s907_s5] sm:$0xff]  ;;  %s474_s5 = sshll.u32 %s909_s7, 4  ;;  %s475_s5 = int_to_ptr.hbm [resolvable:$true] %s474_s5 }
  0x19   :  { %v691_v1 = vld [vmem:[%s906_s4] ss:$0 sm:$0xff] }
  0x1a   :  { %251 = vmatpush.bf16.msra.mxu0 %v649_v21  ;;  %373 = vmatpush.bf16.msrb.mxu3 %v678_v32  ;;  %v692_v6 = vld [vmem:[%s908_s6] ss:$0 sm:$0xff] }
  0x1b   :  { %264 = vmatpush.bf16.msra.mxu1 %v657_v22 }
  0x1c   :  { %277 = vmatpush.bf16.msra.mxu2 %v665_v23 }
  0x1e   :  { %252 = vmatpush.bf16.msra.mxu0 %v648_v24  ;;  %374 = vmatpush.bf16.msrb.mxu3 %v677_v33 }
  0x1f   :  { %265 = vmatpush.bf16.msra.mxu1 %v656_v25 }
  0x20   :  { %278 = vmatpush.bf16.msra.mxu2 %v664_v26 }
  0x21   :  { %253 = vmatmul.bf16.vlgmr.msra.gmra.mxu0 %v85_v27 }
  0x22   :  { %266 = vmatmul.bf16.vlgmr.msra.gmra.mxu1 %v86_v28  ;;  %375 = vmatpush.bf16.msrb.mxu3 %v676_v34 }
  0x23   :  { %279 = vmatmul.bf16.vlgmr.msra.gmra.mxu2 %v87_v29  ;;  %453 = vmatpush.bf16.msrb.mxu0 %v688_v44 }
  0x26   :  { %376 = vmatpush.bf16.msrb.mxu3 %v675_v36 }
  0x27   :  { %454 = vmatpush.bf16.msrb.mxu0 %v687_v46 }
  0x2a   :  { %377 = vmatpush.bf16.msrb.mxu3 %v674_v37 }
  0x2b   :  { %455 = vmatpush.bf16.msrb.mxu0 %v686_v51 }
  0x2e   :  { %378 = vmatpush.bf16.msrb.mxu3 %v673_v38 }
  0x2f   :  { %456 = vmatpush.bf16.msrb.mxu0 %v685_v54 }
  0x33   :  { %457 = vmatpush.bf16.msrb.mxu0 %v684_v57 }
  0x37   :  { %458 = vmatpush.bf16.msrb.mxu0 %v683_v58 }
  0x3b   :  { %459 = vmatpush.bf16.msrb.mxu0 %v682_v61 }
  0x3f   :  { %460 = vmatpush.bf16.msrb.mxu0 %v681_v0 }
  0x93   :  { %v293_v35 = vpop.f32.mrf.mxu3 }
  0x9b   :  { %v295_v40 = vpop.f32.mrf.mxu3 }
  0x9e   :  { %v254_v41 = vpop.f32.mrf.mxu0 }
  0x9f   :  { %v267_v42 = vpop.f32.mrf.mxu1  ;;  %v255_v43 = vadd.f32 %v690_v39, %v254_v41 }
  0xa1   :  { %v268_v45 = vadd.f32 %v267_v42, %v255_v43 }
  0xa6   :  { %v280_v47 = vpop.f32.mrf.mxu2  ;;  %v256_v49 = vpop.f32.mrf.mxu0 }
  0xa7   :  { %v281_v48 = vadd.f32 %v280_v47, %v268_v45  ;;  %v269_v50 = vpop.f32.mrf.mxu1 }
  0xa9   :  { %v294_v52 = vadd.f32 %v293_v35, %v281_v48 }
  0xab   :  { %v297_v53 = vsub.f32 0.0, %v294_v52 }
  0xad   :  { %v298_v55 = vmul.f32 1.442695, %v297_v53 }
  0xae   :  { %v282_v56 = vpop.f32.mrf.mxu2 }
  0xaf   :  { %693 = vpow2.f32 %v298_v55 }
  0xb5   :  { %v694_v59 = vpop.eup %693 }
  0xb6   :  { %v300_v60 = vadd.f32 1.0, %v694_v59 }
  0xb8   :  { %695 = vrcp.f32 %v300_v60 }
  0xbe   :  { %v696_v62 = vpop.eup %695 }
  0xbf   :  { %v302_v63 = vpack.c.bf16 %v696_v62, %v696_v62 }
  0xc1   :  { %379 = vmatmul.bf16.vlgmr.msrb.gmra.mxu3 %v302_v63 }
 0x144   :  { %v380_v2 = vpop.f32.mrf.mxu3 }
 0x145   :  { %v381_v3 = vadd.f32 %v691_v1, %v380_v2 }
 0x147   :  { %v384_v4 = vpack.c.bf16 %v381_v3, %v381_v3 }
 0x149   :  { %461 = vmatmul.bf16.vlgmr.msrb.gmra.mxu0 %v384_v4 }
 0x14c   :  { %v382_v5 = vpop.f32.mrf.mxu3 }
 0x1c6   :  { %v462_v7 = vpop.f32.mrf.mxu0 }
 0x1c7   :  { %v463_v8 = vadd.f32 %v692_v6, %v462_v7 }
 0x1c9   :  { %466 = vst [vmem:[#allocation2] sm:$0x3] %v463_v8 }
 0x1ca   :  { %477 = dma.vmem_to_hbm [thread:$0]  %s473_s16, 32, %s475_s5, [#allocation3]  }
 0x1ce   :  { %v464_v9 = vpop.f32.mrf.mxu0 }
 0x1cf   :  { %721 = dma.done.wait [#allocation3], 32  }
 0x1d0   :  { %722 = vsyncadd [#allocation3], 4294967264 }
 0x1d1   :  { %482 = vsyncpa [#allocation3], 1 }

</bundles_post_ra>
